<compile_context>
chip_gen: v5e
topology: v5e:2x2
jax: 0.10.0
libtpu: 0.0.40
codegen_flags: <defaults>
</compile_context>

<pallas_src>
import math
from functools import partial

import numpy as np
import jax
import jax.numpy as jnp
from jax.experimental import pallas as pl
from jax.experimental.pallas import tpu as pltpu


# Matmul-operand / mid-scratch precision.  bf16 feeds the MXU at full rate;
# accumulation, biases and GELU stay f32.  Set to jnp.float32 for bit-closer
# agreement with the f32 PyTorch reference.
COMPUTE_DTYPE = jnp.bfloat16


def _round_up(x, m):
    return (x + m - 1) // m * m


# ----------------------------------------------------------------------------
# Probe whether exact (erf-based) GELU lowers on this Mosaic build; if not,
# fall back to the tanh approximation (tiny numerical difference vs torch's
# default exact nn.GELU()).
# ----------------------------------------------------------------------------
def _erf_supported() -> bool:
    def _k(x_ref, o_ref):
        o_ref[...] = jax.lax.erf(x_ref[...])

    try:
        x = jnp.zeros((8, 128), jnp.float32)
        out = pl.pallas_call(
            _k, out_shape=jax.ShapeDtypeStruct((8, 128), jnp.float32))(x)
        jax.block_until_ready(out)
        return True
    except Exception:
        return False


_USE_EXACT_GELU = _erf_supported()
_INV_SQRT2 = 1.0 / math.sqrt(2.0)


def _gelu(x):
    if _USE_EXACT_GELU:
        # exact GELU, matches torch.nn.GELU() default (approximate='none')
        return 0.5 * x * (1.0 + jax.lax.erf(x * _INV_SQRT2))
    # TODO(synk): tanh-approximate GELU fallback (used only if erf does not
    # lower); also the preferred choice if a v5e profile shows the erf
    # polynomial saturating the VALU (tanh uses the otherwise-idle EUP slot).
    return jax.nn.gelu(x, approximate=True)


# ----------------------------------------------------------------------------
# VMEM budgeting helpers ((8,128)-tile aware).
# ----------------------------------------------------------------------------
def _padded_vmem_bytes(shape, dtype):
    """Bytes a buffer really occupies in VMEM: last dim padded to 128 lanes,
    second-minor dim padded to the dtype's sublane tile (8/16/32)."""
    itemsize = jnp.dtype(dtype).itemsize
    dims = [int(d) for d in shape]
    if not dims:
        return itemsize
    dims[-1] = _round_up(dims[-1], 128)
    if len(dims) >= 2:
        dims[-2] = _round_up(dims[-2], max(8, 32 // itemsize))
    n = 1
    for d in dims:
        n *= d
    return n * itemsize


def _query_vmem_capacity_bytes():
    try:
        info = pltpu.get_tpu_info()
        cap = int(getattr(info, "vmem_capacity_bytes", 0))
        if cap > 0:
            return cap
    except Exception:
        pass
    return 64 * (1 << 20)          # conservative default (v7x per-core VMEM)


_VMEM_CAP = _query_vmem_capacity_bytes()


# ----------------------------------------------------------------------------
# Fused kernel: conv2d(d_model->d_ff, KxK, same) -> GELU -> conv2d(d_ff->d_model)
# ----------------------------------------------------------------------------
def _fused_conv_kernel(x_ref, w1_ref, b1_ref, w2_ref, b2_ref,
                       o_ref, mid_ref, p1_ref, p2_ref, *,
                       H, W, Wp, K, p, MC, fold1, fold2):
    """One batch element.

    x_ref   : (1, L, C_in)        flattened padded image + p guard zeros per side
    w1_ref  : (K*K*C_in, C_ff)    bf16, im2col weight layout
    b1_ref  : (1, C_ff)           f32
    w2_ref  : (K*K*C_ff, C_out)   bf16, im2col weight layout
    b2_ref  : (1, C_out)          f32
    o_ref   : (1, H*Wp, C_out)    pad columns are garbage; wrapper slices them out
    mid_ref : (L, C_ff)           scratch, same flat-padded layout as x_ref
    p1_ref  : (MC, K*K*C_in)      im2col patch scratch for conv1 (dummy if !fold1)
    p2_ref  : (MC, K*K*C_ff)      im2col patch scratch for conv2 (dummy if !fold2)
    """
    cin = x_ref.shape[2]
    cff = mid_ref.shape[1]
    cout = o_ref.shape[2]
    M = H * Wp
    L = mid_ref.shape[0]
    border = p + p * Wp                      # guard + p padded rows per side

    # Zero only the row/guard borders of the mid scratch (the interior is fully
    # overwritten below).  Done every step rather than pl.when(pid == 0): with a
    # "parallel" grid axis the batch may be split across TensorCores (each with
    # its own scratch), and only one core ever sees program_id == 0.
    mid_ref[0:border, :] = jnp.zeros((border, cff), mid_ref.dtype)
    mid_ref[L - border:L, :] = jnp.zeros((border, cff), mid_ref.dtype)

    taps = [(kh, kw) for kh in range(K) for kw in range(K)]

    # ---- pass 1: conv1 (C_in -> C_ff) + GELU + pad-column mask -> mid ----
    for c0 in range(0, M, MC):
        mc = min(MC, M - c0)
        if fold1:
            # im2col: one (mc, K*K*C_in) patch, single MXU matmul per chunk.
            for t, (kh, kw) in enumerate(taps):
                s = c0 + kh * Wp + kw
                p1_ref[0:mc, t * cin:(t + 1) * cin] = x_ref[0, s:s + mc, :]
            acc = jnp.dot(p1_ref[0:mc, :], w1_ref[...],
                          preferred_element_type=jnp.float32)
        else:
            acc = jnp.zeros((mc, cff), jnp.float32)
            for t, (kh, kw) in enumerate(taps):
                s = c0 + kh * Wp + kw
                acc = acc + jnp.dot(x_ref[0, s:s + mc, :],
                                    w1_ref[t * cin:(t + 1) * cin, :],
                                    preferred_element_type=jnp.float32)
        acc = acc + b1_ref[...].astype(jnp.float32)
        val = _gelu(acc)                                       # f32 VPU/EUP math
        # Zero the W-padding columns (in-kernel mask; no HBM mask input).
        col = (c0 + jax.lax.broadcasted_iota(jnp.int32, (mc, cff), 0)) % Wp
        val = jnp.where((col >= p) & (col < p + W), val, 0.0)
        # TODO(synk): lane-dense (>=128-wide) mid store layout when C_ff < 128.
        mid_ref[border + c0:border + c0 + mc, :] = val.astype(mid_ref.dtype)

    # ---- pass 2: conv2 (C_ff -> C_out) -> output ----
    for c0 in range(0, M, MC):
        mc = min(MC, M - c0)
        if fold2:
            for t, (kh, kw) in enumerate(taps):
                s = c0 + kh * Wp + kw
                p2_ref[0:mc, t * cff:(t + 1) * cff] = mid_ref[s:s + mc, :]
            acc2 = jnp.dot(p2_ref[0:mc, :], w2_ref[...],
                           preferred_element_type=jnp.float32)
        else:
            acc2 = jnp.zeros((mc, cout), jnp.float32)
            for t, (kh, kw) in enumerate(taps):
                s = c0 + kh * Wp + kw
                acc2 = acc2 + jnp.dot(mid_ref[s:s + mc, :],
                                      w2_ref[t * cff:(t + 1) * cff, :],
                                      preferred_element_type=jnp.float32)
        acc2 = acc2 + b2_ref[...].astype(jnp.float32)
        # TODO(synk): lane-dense output layout (e.g. (1, H, Wp*C_out)) when
        # C_out < 128 to avoid masked partial stores.
        o_ref[0, c0:c0 + mc, :] = acc2.astype(o_ref.dtype)


def _fused_conv_gelu_conv_impl(x_img, w1f, b1, w2f, b2, K):
    """x_img: (B, H, W, C_in) -> (B, H, W, C_out), 'same' padding (odd K)."""
    B, H, W, cin = x_img.shape
    cff = w1f.shape[1]
    cout = w2f.shape[1]
    p = (K - 1) // 2
    Hp, Wp = H + 2 * p, W + 2 * p
    M = H * Wp
    L = Hp * Wp + 2 * p

    # Zero 'same' padding + flat guard (built once per (B, period) shape).
    # TODO(synk): fold the padding into the kernel (manual DMA of unpadded rows
    # into a zeroed VMEM scratch via memory_space=pl.ANY) to remove this extra
    # HBM round trip per period; same for the post-kernel pad-column slice.
    xp = jnp.pad(x_img.astype(COMPUTE_DTYPE), ((0, 0), (p, p), (p, p), (0, 0)))
    xflat = jnp.pad(xp.reshape(B, Hp * Wp, cin), ((0, 0), (p, p), (0, 0)))

    # Fold the K*K taps into the MXU contraction only when the channel dim is
    # too small to fill it on its own.
    fold1 = cin < 128
    fold2 = cff < 128

    # Row-chunk size: keep the f32 accumulator (MC, max(C_ff, C_out)) modest so
    # it does not blow out the vreg file / spill to VMEM on every chunk.
    MC_target = max(64, min(512, _round_up(32768 // max(cff, cout, 1), 8)))
    MC = min(MC_target, _round_up(M, 8))

    def _estimate(mc):
        p1s = (mc, K * K * cin) if fold1 else (8, 128)
        p2s = (mc, K * K * cff) if fold2 else (8, 128)
        est = (
            2 * _padded_vmem_bytes((1, L, cin), COMPUTE_DTYPE)        # input (x2 buffers)
            # TODO(synk): pl.Buffered(1) on the constant-index weight/bias
            # blocks would drop these to x1.
            + 2 * _padded_vmem_bytes((K * K * cin, cff), COMPUTE_DTYPE)
            + 2 * _padded_vmem_bytes((1, cff), jnp.float32)
            + 2 * _padded_vmem_bytes((K * K * cff, cout), COMPUTE_DTYPE)
            + 2 * _padded_vmem_bytes((1, cout), jnp.float32)
            + 2 * _padded_vmem_bytes((1, M, cout), jnp.float32)       # output (x2 buffers)
            + _padded_vmem_bytes((L, cff), COMPUTE_DTYPE)             # mid scratch
            + _padded_vmem_bytes(p1s, COMPUTE_DTYPE)
            + _padded_vmem_bytes(p2s, COMPUTE_DTYPE)
            + 3 * _padded_vmem_bytes((mc, max(cff, cout)), jnp.float32))  # live temporaries
        return int(est * 1.25) + (1 << 20), p1s, p2s

    cap = _VMEM_CAP
    est, p1_shape, p2_shape = _estimate(MC)
    while est > int(0.9 * cap) and MC > 64:
        MC = max(64, MC // 2)
        est, p1_shape, p2_shape = _estimate(MC)
    # TODO(synk): if est still exceeds capacity (very large H*W*d_ff), the right
    # fix is a second "parallel" grid axis over H row-blocks with a (K-1) halo
    # (which also gives v7x's two TensorCores >= 2*B independent work units).
    vmem_limit = int(min(int(0.9 * cap), max(est, 32 << 20)))

    out = pl.pallas_call(
        partial(_fused_conv_kernel, H=H, W=W, Wp=Wp, K=K, p=p, MC=MC,
                fold1=fold1, fold2=fold2),
        out_shape=jax.ShapeDtypeStruct((B, M, cout), jnp.float32),
        grid=(B,),
        in_specs=[
            pl.BlockSpec((1, L, cin), lambda b: (b, 0, 0)),
            pl.BlockSpec((K * K * cin, cff), lambda b: (0, 0)),
            pl.BlockSpec((1, cff), lambda b: (0, 0)),
            pl.BlockSpec((K * K * cff, cout), lambda b: (0, 0)),
            pl.BlockSpec((1, cout), lambda b: (0, 0)),
        ],
        out_specs=pl.BlockSpec((1, M, cout), lambda b: (b, 0, 0)),
        scratch_shapes=[
            pltpu.VMEM((L, cff), COMPUTE_DTYPE),       # mid (flat padded layout)
            pltpu.VMEM(p1_shape, COMPUTE_DTYPE),       # conv1 im2col patch
            pltpu.VMEM(p2_shape, COMPUTE_DTYPE),       # conv2 im2col patch
        ],
        compiler_params=pltpu.CompilerParams(
            dimension_semantics=("parallel",),
            vmem_limit_bytes=vmem_limit),
    )(xflat, w1f, b1, w2f, b2)

    # Drop the horizontal padding columns (garbage there) -> (B, H, W, C_out).
    return out.reshape(B, H, Wp, cout)[:, :, p:p + W, :]


# jit so the wrapper-side pads / slice fuse with neighbouring ops per period shape.
fused_conv_gelu_conv = jax.jit(_fused_conv_gelu_conv_impl, static_argnums=(5,))


# ----------------------------------------------------------------------------
# FFT period selection (mirror of reference FFT()).  Runs eagerly: downstream
# shapes are data-dependent, exactly like the reference's .detach().cpu().numpy().
# ----------------------------------------------------------------------------
def fft_period(x, k):
    T = x.shape[1]
    xf = jnp.fft.rfft(x, axis=1)
    amp = jnp.abs(xf)                               # (B, F, N)
    freq = amp.mean(axis=0).mean(axis=1)            # (F,)
    freq = freq.at[0].set(0.0)
    _, top_idx = jax.lax.top_k(freq, k)
    top_idx = np.asarray(jax.device_get(top_idx))   # concrete indices (host sync)
    # Note: like the reference, this assumes top_idx never contains 0
    # (freq[0] is zeroed, so only pathological k would select it).
    period = T // top_idx
    period_weight = amp.mean(axis=-1)[:, top_idx]   # (B, k)
    return period, period_weight


def prepare_conv_params(w1, b1, w2, b2):
    """w1: (K, K, C_in, C_ff), w2: (K, K, C_ff, C_out); biases (1, C).

    Weights are reshaped to im2col layout (K*K*C_in, C_ff) / (K*K*C_ff, C_out)
    so each conv is a single deep-contraction MXU matmul per row chunk."""
    K = w1.shape[0]
    cin, cff = w1.shape[2], w1.shape[3]
    cout = w2.shape[3]
    w1f = w1.reshape(K * K * cin, cff).astype(COMPUTE_DTYPE)
    w2f = w2.reshape(K * K * cff, cout).astype(COMPUTE_DTYPE)
    b1r = b1.reshape(1, cff).astype(jnp.float32)
    b2r = b2.reshape(1, cout).astype(jnp.float32)
    return K, w1f, b1r, w2f, b2r


def block_forward(x, w1, b1, w2, b2, k):
    B, T, N = x.shape
    K, w1f, b1r, w2f, b2r = prepare_conv_params(w1, b1, w2, b2)
    x_c = x.astype(COMPUTE_DTYPE)                   # cast once, outside the loop
    period_list, period_weight = fft_period(x, k)

    res_sum = jnp.zeros_like(x)
    period = 1
    for i in range(k):
        period = int(period_list[i])
        if T % period != 0:
            length = (T // period + 1) * period
            pad = jnp.zeros((B, length - T, N), x_c.dtype)
            out = jnp.concatenate([x_c, pad], axis=1)
        else:
            length = T
            out = x_c
        H = length // period
        W = period
        out = out.reshape(B, H, W, N)               # NHWC (reference's pre-permute view)
        out = fused_conv_gelu_conv(out, w1f, b1r, w2f, b2r, K)   # f32
        out = out.reshape(B, H * W, N)[:, :T, :]
        res_sum = res_sum + out

    # Reproduce the reference exactly: softmax(period_weight) is computed but
    # never applied -- the reference does `torch.sum(res * period, dim=-1)`
    # where `period` is the *scalar* left over from the last loop iteration.
    _ = jax.nn.softmax(period_weight, axis=1)[:, None, None, :]
    res = res_sum * period
    return res + x


if __name__ == "__main__":
    B, T = 2, 16
    d_model, d_ff, num_kernels, k = 8, 16, 3, 2

    key = jax.random.PRNGKey(0)
    kx, k1, k2, k3, k4 = jax.random.split(key, 5)
    x = jax.random.normal(kx, (B, T, d_model), jnp.float32)
    # conv weights, layout (K, K, C_in, C_out)
    w1 = 0.1 * jax.random.normal(k1, (num_kernels, num_kernels, d_model, d_ff), jnp.float32)
    b1 = 0.1 * jax.random.normal(k2, (1, d_ff), jnp.float32)
    w2 = 0.1 * jax.random.normal(k3, (num_kernels, num_kernels, d_ff, d_model), jnp.float32)
    b2 = 0.1 * jax.random.normal(k4, (1, d_model), jnp.float32)

    out = block_forward(x, w1, b1, w2, b2, k)
    jax.block_until_ready(out)
    assert out.shape == (B, T, d_model) and out.dtype == jnp.float32
    assert bool(jnp.all(jnp.isfinite(out)))
    print("KERNEL_OK")
</pallas_src>

<mosaic_0001>
module attributes {stable_mosaic.version = 11 : i64} {
  func.func @_k(%arg0: memref<8x128xf32, #tpu.memory_space<vmem>>, %arg1: memref<8x128xf32, #tpu.memory_space<vmem>>) attributes {dimension_semantics = [], scalar_prefetch = 0 : i64, scratch_operands = 0 : i64, tpu.core_type = #tpu.core_type<tc>} {
    %c0 = arith.constant 0 : index
    %c0_0 = arith.constant 0 : index
    %0 = vector.load %arg0[%c0, %c0_0] : memref<8x128xf32, #tpu.memory_space<vmem>>, vector<8x128xf32>
    %1 = math.erf %0 : vector<8x128xf32>
    %c0_1 = arith.constant 0 : index
    %c0_2 = arith.constant 0 : index
    %2 = vector.load %arg1[%c0_1, %c0_2] : memref<8x128xf32, #tpu.memory_space<vmem>>, vector<8x128xf32>
    tpu.vector_store %arg1[%c0_1, %c0_2], %1 {strides = array<i32>} : memref<8x128xf32, #tpu.memory_space<vmem>>, vector<8x128xf32>,
    return
  }
}

module attributes {stable_mosaic.version = 11 : i64} {
  func.func @_fused_conv_kernel(%arg0: i32, %arg1: memref<1x38x8xbf16, #tpu.memory_space<vmem>>, %arg2: memref<72x16xbf16, #tpu.memory_space<vmem>>, %arg3: memref<1x16xf32, #tpu.memory_space<vmem>>, %arg4: memref<144x8xbf16, #tpu.memory_space<vmem>>, %arg5: memref<1x8xf32, #tpu.memory_space<vmem>>, %arg6: memref<1x24x8xf32, #tpu.memory_space<vmem>>, %arg7: memref<38x16xbf16, #tpu.memory_space<vmem>>, %arg8: memref<24x72xbf16, #tpu.memory_space<vmem>>, %arg9: memref<24x144xbf16, #tpu.memory_space<vmem>>) attributes {dimension_semantics = [#tpu.dimension_semantics<parallel>], iteration_bounds = array<i64: 2>, scalar_prefetch = 0 : i64, scratch_operands = 3 : i64, tpu.core_type = #tpu.core_type<tc>, window_params = [{transform_indices = @transform_0, window_bounds = array<i64: 1, 38, 8>}, {pipeline_mode = #tpu.pipeline_mode<synchronous>, transform_indices = @transform_1, window_bounds = array<i64: 72, 16>}, {pipeline_mode = #tpu.pipeline_mode<synchronous>, transform_indices = @transform_2, window_bounds = array<i64: 1, 16>}, {pipeline_mode = #tpu.pipeline_mode<synchronous>, transform_indices = @transform_3, window_bounds = array<i64: 144, 8>}, {pipeline_mode = #tpu.pipeline_mode<synchronous>, transform_indices = @transform_4, window_bounds = array<i64: 1, 8>}, {transform_indices = @transform_5, window_bounds = array<i64: 1, 24, 8>}]} {
    %cst = arith.constant 0.000000e+00 : bf16
    %0 = vector.broadcast %cst : bf16 to vector<7x16xbf16>
    %c0 = arith.constant 0 : index
    %c0_0 = arith.constant 0 : index
    %1 = vector.load %arg7[%c0, %c0_0] : memref<38x16xbf16, #tpu.memory_space<vmem>>, vector<7x16xbf16>
    tpu.vector_store %arg7[%c0, %c0_0], %0 {strides = array<i32>} : memref<38x16xbf16, #tpu.memory_space<vmem>>, vector<7x16xbf16>,
    %cst_1 = arith.constant 0.000000e+00 : bf16
    %2 = vector.broadcast %cst_1 : bf16 to vector<7x16xbf16>
    %c31 = arith.constant 31 : index
    %c0_2 = arith.constant 0 : index
    %3 = vector.load %arg7[%c31, %c0_2] : memref<38x16xbf16, #tpu.memory_space<vmem>>, vector<7x16xbf16>
    tpu.vector_store %arg7[%c31, %c0_2], %2 {strides = array<i32>} : memref<38x16xbf16, #tpu.memory_space<vmem>>, vector<7x16xbf16>,
    %c0_3 = arith.constant 0 : index
    %c0_4 = arith.constant 0 : index
    %c0_5 = arith.constant 0 : index
    %4 = vector.load %arg1[%c0_3, %c0_4, %c0_5] : memref<1x38x8xbf16, #tpu.memory_space<vmem>>, vector<1x24x8xbf16>
    %5 = vector.shape_cast %4 : vector<1x24x8xbf16> to vector<24x8xbf16>
    %c0_6 = arith.constant 0 : index
    %c0_7 = arith.constant 0 : index
    %6 = vector.load %arg8[%c0_6, %c0_7] : memref<24x72xbf16, #tpu.memory_space<vmem>>, vector<24x8xbf16>
    tpu.vector_store %arg8[%c0_6, %c0_7], %5 {strides = array<i32>} : memref<24x72xbf16, #tpu.memory_space<vmem>>, vector<24x8xbf16>,
    %c0_8 = arith.constant 0 : index
    %c1 = arith.constant 1 : index
    %c0_9 = arith.constant 0 : index
    %7 = vector.load %arg1[%c0_8, %c1, %c0_9] : memref<1x38x8xbf16, #tpu.memory_space<vmem>>, vector<1x24x8xbf16>
    %8 = vector.shape_cast %7 : vector<1x24x8xbf16> to vector<24x8xbf16>
    %c0_10 = arith.constant 0 : index
    %c8 = arith.constant 8 : index
    %9 = vector.load %arg8[%c0_10, %c8] : memref<24x72xbf16, #tpu.memory_space<vmem>>, vector<24x8xbf16>
    tpu.vector_store %arg8[%c0_10, %c8], %8 {strides = array<i32>} : memref<24x72xbf16, #tpu.memory_space<vmem>>, vector<24x8xbf16>,
    %c0_11 = arith.constant 0 : index
    %c2 = arith.constant 2 : index
    %c0_12 = arith.constant 0 : index
    %10 = vector.load %arg1[%c0_11, %c2, %c0_12] : memref<1x38x8xbf16, #tpu.memory_space<vmem>>, vector<1x24x8xbf16>
    %11 = vector.shape_cast %10 : vector<1x24x8xbf16> to vector<24x8xbf16>
    %c0_13 = arith.constant 0 : index
    %c16 = arith.constant 16 : index
    %12 = vector.load %arg8[%c0_13, %c16] : memref<24x72xbf16, #tpu.memory_space<vmem>>, vector<24x8xbf16>
    tpu.vector_store %arg8[%c0_13, %c16], %11 {strides = array<i32>} : memref<24x72xbf16, #tpu.memory_space<vmem>>, vector<24x8xbf16>,
    %c0_14 = arith.constant 0 : index
    %c6 = arith.constant 6 : index
    %c0_15 = arith.constant 0 : index
    %13 = vector.load %arg1[%c0_14, %c6, %c0_15] : memref<1x38x8xbf16, #tpu.memory_space<vmem>>, vector<1x24x8xbf16>
    %14 = vector.shape_cast %13 : vector<1x24x8xbf16> to vector<24x8xbf16>
    %c0_16 = arith.constant 0 : index
    %c24 = arith.constant 24 : index
    %15 = vector.load %arg8[%c0_16, %c24] : memref<24x72xbf16, #tpu.memory_space<vmem>>, vector<24x8xbf16>
    tpu.vector_store %arg8[%c0_16, %c24], %14 {strides = array<i32>} : memref<24x72xbf16, #tpu.memory_space<vmem>>, vector<24x8xbf16>,
    %c0_17 = arith.constant 0 : index
    %c7 = arith.constant 7 : index
    %c0_18 = arith.constant 0 : index
    %16 = vector.load %arg1[%c0_17, %c7, %c0_18] : memref<1x38x8xbf16, #tpu.memory_space<vmem>>, vector<1x24x8xbf16>
    %17 = vector.shape_cast %16 : vector<1x24x8xbf16> to vector<24x8xbf16>
    %c0_19 = arith.constant 0 : index
    %c32 = arith.constant 32 : index
    %18 = vector.load %arg8[%c0_19, %c32] : memref<24x72xbf16, #tpu.memory_space<vmem>>, vector<24x8xbf16>
    tpu.vector_store %arg8[%c0_19, %c32], %17 {strides = array<i32>} : memref<24x72xbf16, #tpu.memory_space<vmem>>, vector<24x8xbf16>,
    %c0_20 = arith.constant 0 : index
    %c8_21 = arith.constant 8 : index
    %c0_22 = arith.constant 0 : index
    %19 = vector.load %arg1[%c0_20, %c8_21, %c0_22] : memref<1x38x8xbf16, #tpu.memory_space<vmem>>, vector<1x24x8xbf16>
    %20 = vector.shape_cast %19 : vector<1x24x8xbf16> to vector<24x8xbf16>
    %c0_23 = arith.constant 0 : index
    %c40 = arith.constant 40 : index
    %21 = vector.load %arg8[%c0_23, %c40] : memref<24x72xbf16, #tpu.memory_space<vmem>>, vector<24x8xbf16>
    tpu.vector_store %arg8[%c0_23, %c40], %20 {strides = array<i32>} : memref<24x72xbf16, #tpu.memory_space<vmem>>, vector<24x8xbf16>,
    %c0_24 = arith.constant 0 : index
    %c12 = arith.constant 12 : index
    %c0_25 = arith.constant 0 : index
    %22 = vector.load %arg1[%c0_24, %c12, %c0_25] : memref<1x38x8xbf16, #tpu.memory_space<vmem>>, vector<1x24x8xbf16>
    %23 = vector.shape_cast %22 : vector<1x24x8xbf16> to vector<24x8xbf16>
    %c0_26 = arith.constant 0 : index
    %c48 = arith.constant 48 : index
    %24 = vector.load %arg8[%c0_26, %c48] : memref<24x72xbf16, #tpu.memory_space<vmem>>, vector<24x8xbf16>
    tpu.vector_store %arg8[%c0_26, %c48], %23 {strides = array<i32>} : memref<24x72xbf16, #tpu.memory_space<vmem>>, vector<24x8xbf16>,
    %c0_27 = arith.constant 0 : index
    %c13 = arith.constant 13 : index
    %c0_28 = arith.constant 0 : index
    %25 = vector.load %arg1[%c0_27, %c13, %c0_28] : memref<1x38x8xbf16, #tpu.memory_space<vmem>>, vector<1x24x8xbf16>
    %26 = vector.shape_cast %25 : vector<1x24x8xbf16> to vector<24x8xbf16>
    %c0_29 = arith.constant 0 : index
    %c56 = arith.constant 56 : index
    %27 = vector.load %arg8[%c0_29, %c56] : memref<24x72xbf16, #tpu.memory_space<vmem>>, vector<24x8xbf16>
    tpu.vector_store %arg8[%c0_29, %c56], %26 {strides = array<i32>} : memref<24x72xbf16, #tpu.memory_space<vmem>>, vector<24x8xbf16>,
    %c0_30 = arith.constant 0 : index
    %c14 = arith.constant 14 : index
    %c0_31 = arith.constant 0 : index
    %28 = vector.load %arg1[%c0_30, %c14, %c0_31] : memref<1x38x8xbf16, #tpu.memory_space<vmem>>, vector<1x24x8xbf16>
    %29 = vector.shape_cast %28 : vector<1x24x8xbf16> to vector<24x8xbf16>
    %c0_32 = arith.constant 0 : index
    %c64 = arith.constant 64 : index
    %30 = vector.load %arg8[%c0_32, %c64] : memref<24x72xbf16, #tpu.memory_space<vmem>>, vector<24x8xbf16>
    tpu.vector_store %arg8[%c0_32, %c64], %29 {strides = array<i32>} : memref<24x72xbf16, #tpu.memory_space<vmem>>, vector<24x8xbf16>,
    %c0_33 = arith.constant 0 : index
    %c0_34 = arith.constant 0 : index
    %31 = vector.load %arg8[%c0_33, %c0_34] : memref<24x72xbf16, #tpu.memory_space<vmem>>, vector<24x72xbf16>
    %c0_35 = arith.constant 0 : index
    %c0_36 = arith.constant 0 : index
    %32 = vector.load %arg2[%c0_35, %c0_36] : memref<72x16xbf16, #tpu.memory_space<vmem>>, vector<72x16xbf16>
    %cst_37 = arith.constant dense<0.000000e+00> : vector<24x16xf32>
    %33 = tpu.matmul %31, %32, %cst_37 {dimension_numbers = #tpu.dot_dimension_numbers<[1], [0], [0], [1], [0, 0, 1, 1], [], []>} : vector<24x72xbf16>, vector<72x16xbf16>, vector<24x16xf32> -> vector<24x16xf32>
    %c0_38 = arith.constant 0 : index
    %c0_39 = arith.constant 0 : index
    %34 = vector.load %arg3[%c0_38, %c0_39] : memref<1x16xf32, #tpu.memory_space<vmem>>, vector<1x16xf32>
    %35 = vector.broadcast %34 : vector<1x16xf32> to vector<24x16xf32>
    %36 = arith.addf %33, %35 : vector<24x16xf32>
    %37 = arith.mulf %36, %36 : vector<24x16xf32>
    %38 = arith.mulf %36, %37 : vector<24x16xf32>
    %cst_40 = arith.constant 4.471500e-02 : f32
    %39 = vector.broadcast %cst_40 : f32 to vector<24x16xf32>
    %40 = arith.mulf %39, %38 : vector<24x16xf32>
    %41 = arith.addf %36, %40 : vector<24x16xf32>
    %cst_41 = arith.constant 0.797884583 : f32
    %42 = vector.broadcast %cst_41 : f32 to vector<24x16xf32>
    %43 = arith.mulf %42, %41 : vector<24x16xf32>
    %44 = math.tanh %43 : vector<24x16xf32>
    %cst_42 = arith.constant 1.000000e+00 : f32
    %45 = vector.broadcast %cst_42 : f32 to vector<24x16xf32>
    %46 = arith.addf %45, %44 : vector<24x16xf32>
    %cst_43 = arith.constant 5.000000e-01 : f32
    %47 = vector.broadcast %cst_43 : f32 to vector<24x16xf32>
    %48 = arith.mulf %47, %46 : vector<24x16xf32>
    %49 = arith.mulf %36, %48 : vector<24x16xf32>
    %50 = tpu.iota {dimensions = array<i32: 0>} : vector<24x16xi32>
    %c0_i32 = arith.constant 0 : i32
    %51 = vector.broadcast %c0_i32 : i32 to vector<24x16xi32>
    %52 = arith.addi %51, %50 : vector<24x16xi32>
    %c6_i32 = arith.constant 6 : i32
    %c0_i32_44 = arith.constant 0 : i32
    %53 = arith.cmpi eq, %c6_i32, %c0_i32_44 : i32
    %c1_i32 = arith.constant 1 : i32
    %54 = arith.select %53, %c1_i32, %c6_i32 : i32
    %55 = vector.broadcast %54 : i32 to vector<24x16xi32>
    %56 = arith.remsi %52, %55 : vector<24x16xi32>
    %c0_i32_45 = arith.constant 0 : i32
    %57 = vector.broadcast %c0_i32_45 : i32 to vector<24x16xi32>
    %58 = arith.cmpi ne, %56, %57 : vector<24x16xi32>
    %c0_i32_46 = arith.constant 0 : i32
    %59 = vector.broadcast %c0_i32_46 : i32 to vector<24x16xi32>
    %60 = arith.cmpi slt, %56, %59 : vector<24x16xi32>
    %c0_i32_47 = arith.constant 0 : i32
    %61 = arith.cmpi slt, %54, %c0_i32_47 : i32
    %62 = vector.broadcast %61 : i1 to vector<24x16xi1>
    %63 = vector.broadcast %62 : vector<24x16xi1> to vector<24x16xi1>
    %64 = arith.xori %60, %63 : vector<24x16xi1>
    %65 = arith.andi %64, %58 : vector<24x16xi1>
    %66 = vector.broadcast %54 : i32 to vector<24x16xi32>
    %67 = arith.addi %56, %66 : vector<24x16xi32>
    %68 = arith.select %65, %67, %56 : vector<24x16xi1>, vector<24x16xi32>
    %c1_i32_48 = arith.constant 1 : i32
    %69 = vector.broadcast %c1_i32_48 : i32 to vector<24x16xi32>
    %70 = arith.cmpi sge, %68, %69 : vector<24x16xi32>
    %c5_i32 = arith.constant 5 : i32
    %71 = vector.broadcast %c5_i32 : i32 to vector<24x16xi32>
    %72 = arith.cmpi slt, %68, %71 : vector<24x16xi32>
    %73 = arith.andi %70, %72 : vector<24x16xi1>
    %cst_49 = arith.constant 0.000000e+00 : f32
    %74 = vector.broadcast %cst_49 : f32 to vector<24x16xf32>
    %75 = arith.select %73, %49, %74 : vector<24x16xi1>, vector<24x16xf32>
    %76 = arith.truncf %75 : vector<24x16xf32> to vector<24x16xbf16>
    %c7_50 = arith.constant 7 : index
    %c0_51 = arith.constant 0 : index
    %77 = vector.load %arg7[%c7_50, %c0_51] : memref<38x16xbf16, #tpu.memory_space<vmem>>, vector<24x16xbf16>
    tpu.vector_store %arg7[%c7_50, %c0_51], %76 {strides = array<i32>} : memref<38x16xbf16, #tpu.memory_space<vmem>>, vector<24x16xbf16>,
    %c0_52 = arith.constant 0 : index
    %c0_53 = arith.constant 0 : index
    %78 = vector.load %arg7[%c0_52, %c0_53] : memref<38x16xbf16, #tpu.memory_space<vmem>>, vector<24x16xbf16>
    %c0_54 = arith.constant 0 : index
    %c0_55 = arith.constant 0 : index
    %79 = vector.load %arg9[%c0_54, %c0_55] : memref<24x144xbf16, #tpu.memory_space<vmem>>, vector<24x16xbf16>
    tpu.vector_store %arg9[%c0_54, %c0_55], %78 {strides = array<i32>} : memref<24x144xbf16, #tpu.memory_space<vmem>>, vector<24x16xbf16>,
    %c1_56 = arith.constant 1 : index
    %c0_57 = arith.constant 0 : index
    %80 = vector.load %arg7[%c1_56, %c0_57] : memref<38x16xbf16, #tpu.memory_space<vmem>>, vector<24x16xbf16>
    %c0_58 = arith.constant 0 : index
    %c16_59 = arith.constant 16 : index
    %81 = vector.load %arg9[%c0_58, %c16_59] : memref<24x144xbf16, #tpu.memory_space<vmem>>, vector<24x16xbf16>
    tpu.vector_store %arg9[%c0_58, %c16_59], %80 {strides = array<i32>} : memref<24x144xbf16, #tpu.memory_space<vmem>>, vector<24x16xbf16>,
    %c2_60 = arith.constant 2 : index
    %c0_61 = arith.constant 0 : index
    %82 = vector.load %arg7[%c2_60, %c0_61] : memref<38x16xbf16, #tpu.memory_space<vmem>>, vector<24x16xbf16>
    %c0_62 = arith.constant 0 : index
    %c32_63 = arith.constant 32 : index
    %83 = vector.load %arg9[%c0_62, %c32_63] : memref<24x144xbf16, #tpu.memory_space<vmem>>, vector<24x16xbf16>
    tpu.vector_store %arg9[%c0_62, %c32_63], %82 {strides = array<i32>} : memref<24x144xbf16, #tpu.memory_space<vmem>>, vector<24x16xbf16>,
    %c6_64 = arith.constant 6 : index
    %c0_65 = arith.constant 0 : index
    %84 = vector.load %arg7[%c6_64, %c0_65] : memref<38x16xbf16, #tpu.memory_space<vmem>>, vector<24x16xbf16>
    %c0_66 = arith.constant 0 : index
    %c48_67 = arith.constant 48 : index
    %85 = vector.load %arg9[%c0_66, %c48_67] : memref<24x144xbf16, #tpu.memory_space<vmem>>, vector<24x16xbf16>
    tpu.vector_store %arg9[%c0_66, %c48_67], %84 {strides = array<i32>} : memref<24x144xbf16, #tpu.memory_space<vmem>>, vector<24x16xbf16>,
    %c7_68 = arith.constant 7 : index
    %c0_69 = arith.constant 0 : index
    %86 = vector.load %arg7[%c7_68, %c0_69] : memref<38x16xbf16, #tpu.memory_space<vmem>>, vector<24x16xbf16>
    %c0_70 = arith.constant 0 : index
    %c64_71 = arith.constant 64 : index
    %87 = vector.load %arg9[%c0_70, %c64_71] : memref<24x144xbf16, #tpu.memory_space<vmem>>, vector<24x16xbf16>
    tpu.vector_store %arg9[%c0_70, %c64_71], %86 {strides = array<i32>} : memref<24x144xbf16, #tpu.memory_space<vmem>>, vector<24x16xbf16>,
    %c8_72 = arith.constant 8 : index
    %c0_73 = arith.constant 0 : index
    %88 = vector.load %arg7[%c8_72, %c0_73] : memref<38x16xbf16, #tpu.memory_space<vmem>>, vector<24x16xbf16>
    %c0_74 = arith.constant 0 : index
    %c80 = arith.constant 80 : index
    %89 = vector.load %arg9[%c0_74, %c80] : memref<24x144xbf16, #tpu.memory_space<vmem>>, vector<24x16xbf16>
    tpu.vector_store %arg9[%c0_74, %c80], %88 {strides = array<i32>} : memref<24x144xbf16, #tpu.memory_space<vmem>>, vector<24x16xbf16>,
    %c12_75 = arith.constant 12 : index
    %c0_76 = arith.constant 0 : index
    %90 = vector.load %arg7[%c12_75, %c0_76] : memref<38x16xbf16, #tpu.memory_space<vmem>>, vector<24x16xbf16>
    %c0_77 = arith.constant 0 : index
    %c96 = arith.constant 96 : index
    %91 = vector.load %arg9[%c0_77, %c96] : memref<24x144xbf16, #tpu.memory_space<vmem>>, vector<24x16xbf16>
    tpu.vector_store %arg9[%c0_77, %c96], %90 {strides = array<i32>} : memref<24x144xbf16, #tpu.memory_space<vmem>>, vector<24x16xbf16>,
    %c13_78 = arith.constant 13 : index
    %c0_79 = arith.constant 0 : index
    %92 = vector.load %arg7[%c13_78, %c0_79] : memref<38x16xbf16, #tpu.memory_space<vmem>>, vector<24x16xbf16>
    %c0_80 = arith.constant 0 : index
    %c112 = arith.constant 112 : index
    %93 = vector.load %arg9[%c0_80, %c112] : memref<24x144xbf16, #tpu.memory_space<vmem>>, vector<24x16xbf16>
    tpu.vector_store %arg9[%c0_80, %c112], %92 {strides = array<i32>} : memref<24x144xbf16, #tpu.memory_space<vmem>>, vector<24x16xbf16>,
    %c14_81 = arith.constant 14 : index
    %c0_82 = arith.constant 0 : index
    %94 = vector.load %arg7[%c14_81, %c0_82] : memref<38x16xbf16, #tpu.memory_space<vmem>>, vector<24x16xbf16>
    %c0_83 = arith.constant 0 : index
    %c128 = arith.constant 128 : index
    %95 = vector.load %arg9[%c0_83, %c128] : memref<24x144xbf16, #tpu.memory_space<vmem>>, vector<24x16xbf16>
    tpu.vector_store %arg9[%c0_83, %c128], %94 {strides = array<i32>} : memref<24x144xbf16, #tpu.memory_space<vmem>>, vector<24x16xbf16>,
    %c0_84 = arith.constant 0 : index
    %c0_85 = arith.constant 0 : index
    %96 = vector.load %arg9[%c0_84, %c0_85] : memref<24x144xbf16, #tpu.memory_space<vmem>>, vector<24x144xbf16>
    %c0_86 = arith.constant 0 : index
    %c0_87 = arith.constant 0 : index
    %97 = vector.load %arg4[%c0_86, %c0_87] : memref<144x8xbf16, #tpu.memory_space<vmem>>, vector<144x8xbf16>
    %cst_88 = arith.constant dense<0.000000e+00> : vector<24x8xf32>
    %98 = tpu.matmul %96, %97, %cst_88 {dimension_numbers = #tpu.dot_dimension_numbers<[1], [0], [0], [1], [0, 0, 1, 1], [], []>} : vector<24x144xbf16>, vector<144x8xbf16>, vector<24x8xf32> -> vector<24x8xf32>
    %c0_89 = arith.constant 0 : index
    %c0_90 = arith.constant 0 : index
    %99 = vector.load %arg5[%c0_89, %c0_90] : memref<1x8xf32, #tpu.memory_space<vmem>>, vector<1x8xf32>
    %100 = vector.broadcast %99 : vector<1x8xf32> to vector<24x8xf32>
    %101 = arith.addf %98, %100 : vector<24x8xf32>
    %c0_91 = arith.constant 0 : index
    %c0_92 = arith.constant 0 : index
    %c0_93 = arith.constant 0 : index
    %102 = vector.load %arg6[%c0_91, %c0_92, %c0_93] : memref<1x24x8xf32, #tpu.memory_space<vmem>>, vector<1x24x8xf32>
    %103 = vector.shape_cast %102 : vector<1x24x8xf32> to vector<24x8xf32>
    %104 = vector.shape_cast %101 : vector<24x8xf32> to vector<1x24x8xf32>
    tpu.vector_store %arg6[%c0_91, %c0_92, %c0_93], %104 {strides = array<i32>} : memref<1x24x8xf32, #tpu.memory_space<vmem>>, vector<1x24x8xf32>,
    return
  }
  func.func @transform_0(%arg0: i32) -> (i32, i32, i32) {
    %c0_i32 = arith.constant 0 : i32
    %c0_i32_0 = arith.constant 0 : i32
    %c0_i32_1 = arith.constant 0 : i32
    return %arg0, %c0_i32, %c0_i32_0 : i32, i32, i32
  }
  func.func @transform_1(%arg0: i32) -> (i32, i32) {
    %c0_i32 = arith.constant 0 : i32
    %c0_i32_0 = arith.constant 0 : i32
    %c0_i32_1 = arith.constant 0 : i32
    return %c0_i32, %c0_i32_0 : i32, i32
  }
  func.func @transform_2(%arg0: i32) -> (i32, i32) {
    %c0_i32 = arith.constant 0 : i32
    %c0_i32_0 = arith.constant 0 : i32
    %c0_i32_1 = arith.constant 0 : i32
    return %c0_i32, %c0_i32_0 : i32, i32
  }
  func.func @transform_3(%arg0: i32) -> (i32, i32) {
    %c0_i32 = arith.constant 0 : i32
    %c0_i32_0 = arith.constant 0 : i32
    %c0_i32_1 = arith.constant 0 : i32
    return %c0_i32, %c0_i32_0 : i32, i32
  }
  func.func @transform_4(%arg0: i32) -> (i32, i32) {
    %c0_i32 = arith.constant 0 : i32
    %c0_i32_0 = arith.constant 0 : i32
    %c0_i32_1 = arith.constant 0 : i32
    return %c0_i32, %c0_i32_0 : i32, i32
  }
  func.func @transform_5(%arg0: i32) -> (i32, i32, i32) {
    %c0_i32 = arith.constant 0 : i32
    %c0_i32_0 = arith.constant 0 : i32
    %c0_i32_1 = arith.constant 0 : i32
    return %arg0, %c0_i32, %c0_i32_0 : i32, i32, i32
  }
}

</mosaic_0001>

<bundles_post_ra>
// kernel: tpu_custom_call.1
= control target key start
LH: loop header
LB: loop body
LE: loop exit
PB: predicated region body
PF: predicated region fallthrough
CT: control target
= control target key end

     0   :  { %6 = vsyncpa [#allocation3], 0  ;;  %s157_s0 = inlined_call_operand.hbm [shape: f32[8,128], index: 0, kind: input, shape index: {}]   ;;  %s158_s1 = inlined_call_operand.hbm [shape: f32[8,128], index: 1, kind: output, shape index: {}]  }
   0x1   :  { %7 = vsyncpa [#allocation4], 0  ;;  %s13_s8 = sshll.u32 %s157_s0, 4  ;;  %s139_s9 = smov [#allocation2]   ;;  %s14_s8 = int_to_ptr.hbm [resolvable:$true] %s13_s8 }
   0x2   :  { %s15_s10 = sshll.u32 %s139_s9, 4  ;;  %s16_s10 = int_to_ptr.vmem [resolvable:$true] %s15_s10 }
   0x3   :  { %18 = dma.hbm_to_vmem [thread:$0]  %s14_s8, 128, %s16_s10, [#allocation3]  }
   0x4   :  { %135 = dma.done.wait [#allocation3], 128  }
   0x5   :  { %136 = vsyncadd [#allocation3], 4294967168  ;;  %v23_v0 = vld [vmem:[#allocation2] sm:$0xff]  ;;  %s140_s0 = smov [#allocation5]   ;;  %s72_s14 = sshll.u32 %s158_s1, 4  ;;  %s73_s14 = int_to_ptr.hbm [resolvable:$true] %s72_s14 }
   0x6   :  { %v24_v1 = vmul.f32 %v23_v0, %v23_v0  ;;  %s70_s11 = sshll.u32 %s140_s0, 4  ;;  %s71_s11 = int_to_ptr.vmem [resolvable:$true] %s70_s11 }
   0x8   :  { %v25_v2 = vmin.f32 %v24_v1, 16.0 }
   0xa   :  { %v26_v3 = vmul.f32 2.1237322e-06, %v25_v2  ;;  %v37_v4 = vmul.f32 3.8918573e-05, %v25_v2 }
   0xc   :  { %v27_v5 = vadd.f32 0.00028619796, %v26_v3  ;;  %v38_v6 = vadd.f32 0.001143296, %v37_v4 }
   0xe   :  { %v28_v7 = vmul.f32 %v27_v5, %v25_v2  ;;  %v39_v8 = vmul.f32 %v38_v6, %v25_v2 }
  0x10   :  { %v29_v9 = vadd.f32 0.0036580483, %v28_v7  ;;  %v40_v10 = vadd.f32 0.014752088, %v39_v8 }
  0x12   :  { %v30_v11 = vmul.f32 %v29_v9, %v25_v2  ;;  %v41_v12 = vmul.f32 %v40_v10, %v25_v2 }
  0x14   :  { %v42_v13 = vadd.f32 0.112945676, %v41_v12  ;;  %v31_v14 = vadd.f32 0.05243302, %v30_v11 }
  0x16   :  { %v43_v15 = vmul.f32 %v42_v13, %v25_v2  ;;  %v32_v17 = vmul.f32 %v31_v14, %v25_v2 }
  0x18   :  { %v44_v16 = vadd.f32 0.4994258, %v43_v15  ;;  %v33_v20 = vadd.f32 0.18741608, %v32_v17 }
  0x1a   :  { %v45_v18 = vmul.f32 %v44_v16, %v25_v2  ;;  %v34_v21 = vmul.f32 %v33_v20, %v25_v2 }
  0x1c   :  { %v46_v19 = vadd.f32 1.0, %v45_v18  ;;  %v35_v24 = vadd.f32 1.1283791, %v34_v21 }
  0x1e   :  { %85 = vrcp.f32 %v46_v19  ;;  %v58_v25 = vand.u32 2147483648, %v46_v19  ;;  %vm52_vm0 = vweird.f32 %v46_v19  ;;  %v56_v27 = vand.u32 2147483647, %v46_v19 }
  0x1f   :  { %v36_v30 = vmul.f32 %v35_v24, %v23_v0 }
  0x20   :  { %v59_v29 = vor.u32 1.1754944e-38, %v58_v25  ;;  %vm57_vm3 = vcmp.eq.f32.partialorder %v56_v27, 8.507059e+37 }
  0x24   :  { %v86_v22 = vpop.eup %85 }
  0x25   :  { %v48_v23 = vmul.f32 %v86_v22, %v46_v19  ;;  %vm53_vm1 = vweird.f32 %v86_v22 }
  0x26   :  { %vm54_vm2 = vmor %vm52_vm0, %vm53_vm1 }
  0x27   :  { %v49_v26 = vsub.f32 1.0, %v48_v23 }
  0x29   :  { %v50_v28 = vmul.f32 %v86_v22, %v49_v26 }
  0x2b   :  { %v51_v31 = vadd.f32 %v86_v22, %v50_v28 }
  0x2d   :  { %v55_v32 = vsel %vm54_vm2, %v86_v22, %v51_v31 }
  0x2e   :  { %v60_v33 = vsel %vm57_vm3, %v59_v29, %v55_v32 }
  0x2f   :  { %v61_v34 = vmul.f32 %v60_v33, %v36_v30 }
  0x31   :  { %v82_v35 = vclamps-f32 %v61_v34, 1.0 }
  0x33   :  { %64 = vst [vmem:[#allocation5] sm:$0xff] %v82_v35 }
  0x34   :  { %75 = dma.vmem_to_hbm [thread:$0]  %s71_s11, 128, %s73_s14, [#allocation4]  }
  0x35   :  { %137 = dma.done.wait [#allocation4], 128  }
  0x36   :  { %138 = vsyncadd [#allocation4], 4294967168 }
  0x37   :  { %80 = vsyncpa [#allocation3], 1 }
  0x38   :  { %81 = vsyncpa [#allocation4], 1 }

// kernel: _fused_conv_gelu_conv_impl.1
= control target key start
LH: loop header
LB: loop body
LE: loop exit
PB: predicated region body
PF: predicated region fallthrough
CT: control target
= control target key end

     0   :  { %s1514_s18 = smov 0   ;;  %s1924_s0 = inlined_call_operand.vmem [shape: bf16[2,38,8], index: 0, kind: input, shape index: {}]   ;;  %s1925_s1 = inlined_call_operand.vmem [shape: bf16[72,16], index: 1, kind: input, shape index: {}]   ;;  %s1926_s2 = inlined_call_operand.vmem [shape: f32[1,16], index: 2, kind: input, shape index: {}]   ;;  %s1927_s3 = inlined_call_operand.vmem [shape: bf16[144,8], index: 3, kind: input, shape index: {}]   ;;  %s1928_s4 = inlined_call_operand.vmem [shape: f32[1,8], index: 4, kind: input, shape index: {}]   ;;  %s1929_s5 = inlined_call_operand.vmem [shape: f32[2,24,8], index: 5, kind: output, shape index: {}]  }
   0x1 LB: > { %s1323_s19 = sadd.s32 4294967295, %s1470_s18   ;;  %p1327_p0 = scmp.ge.s32.totalorder %s1470_s18, 1  ;;  %s1470_s18 = sphi %s1514_s18, %s15_s18  }
   0x2   : > { %p187_p1 = scmp.lt.s32.totalorder %s1470_s18, 3 }
   0x4   : > { %p188_p2 = pnand %p1327_p0, %p187_p1 }
   0x5   : > { %p215_p3 = scmp.lt.s32.totalorder (!%p188_p2), %s1323_s19, 1  ;;  %s1472_s24 = smov (!%p188_p2), 16  }
   0x6   : > { %191 = sbr.rel (%p188_p2) target bundleno = 687 (0x2af), region = 40  ;;  %s1473_s25 = smov (!%p188_p2), 32  }
   0x7   : > { %s1474_s26 = smov (!%p188_p2), 24   ;;  %s1475_s27 = smov (!%p188_p2), 8  }
   0x8   : > { %s1476_s28 = smov (!%p188_p2), 48   ;;  %s1477_s29 = smov (!%p188_p2), 40  }
   0x9   : > { %s1478_s30 = smov (!%p188_p2), 56   ;;  %s1479_s6 = smov (!%p188_p2), 64  }
   0xb   : > { %vm1930_vm0 = vcmask 125952   ;;  %s1962_s19 = smov (!%p215_p3, %s1323_s19), 1  ;;  %vm227_vm1 = vsmask.f32 3328  ;;  %v229_v0 = vld [vmem:[#allocation2] sm:$0xf] }
   0xc   : > { %vm1526_vm2 = vmand %vm1930_vm0, %vm227_vm1  ;;  %s1434_s20 = smul.u32 20, %s1962_s19  ;;  %vm308_vm3 = vcmask 1042432   ;;  %vm309_vm4 = vcmask 1046532   ;;  %vm372_vm5 = vsmask.f32 256  ;;  %vm342_vm9 = vcmask 1040384  }
   0xd   : > { %v230_v2 = vsel %vm1526_vm2, 0, %v229_v0  ;;  %vm373_vm6 = vsmask.f32 4368  ;;  %vm1542_vm7 = vmor %vm308_vm3, %vm309_vm4  ;;  %vm343_vm10 = vcmask 1044484   ;;  %vm251_vm11 = vsmask.f32 7440 }
   0xe   : > { %231 = vst [vmem:[#allocation2] sm:$0xf] %v230_v2  ;;  %s1536_s23 = scalar_lea.vmem %s1924_s0, %s1434_s20  ;;  %vm1553_vm8 = vmor %vm372_vm5, %vm373_vm6  ;;  %vm446_vm14 = vcmask 1041408   ;;  %vm447_vm15 = vcmask 1045508   ;;  %vm476_vm3 = vsmask.f32 1280 }
   0xf   : > { %v368_v3 = vld [vmem:[%s1536_s23] sm:$0x8]  ;;  %v369_v4 = vld [vmem:[%s1536_s23 + $0x4] sm:$0xf]  ;;  %v1549_v19 = vld [vmem:[%s1536_s23 + $0x8] sm:$0xf] }
  0x10   : > { %v300_v5 = vld [vmem:[%s1536_s23] sm:$0xe]  ;;  %v376_v6 = vshrl.u32 %v368_v3, 16  ;;  %v381_v7 = vshrl.u32 %v369_v4, 16  ;;  %v384_v8 = vshll.u32 %v369_v4, 16  ;;  %v316_v29 = vrot.slane %v1549_v19, 5  ;;  %vm1567_vm12 = vmor %vm342_vm9, %vm343_vm10 }
  0x11   : > { %v301_v9 = vld [vmem:[%s1536_s23 + $0x4] sm:$0xf]  ;;  %v1330_v11 = vrot.slane %v300_v5, 9  ;;  %v247_v13 = vld [vmem:[%s1536_s23] sm:$0xf]  ;;  %vm1572_vm13 = vmor %vm227_vm1, %vm251_vm11  ;;  %vm243_vm6 = vcmask 60416  }
  0x12   : > { %v313_v12 = vrot.slane %v301_v9, 5  ;;  %v248_v14 = vld [vmem:[%s1536_s23 + $0x4] sm:$0xf]  ;;  %v1332_v15 = vrot.slane %v376_v6, 11  ;;  %v383_v16 = vrot.slane %v381_v7, 7  ;;  %v254_v17 = vshrl.u32 %v247_v13, 16  ;;  %vm1613_vm1 = vmor %vm446_vm14, %vm447_vm15 }
  0x13   : > { %v257_v18 = vshll.u32 %v247_v13, 16  ;;  %v263_v22 = vshll.u32 %v248_v14, 16  ;;  %v267_v26 = vshrl.u32 %v248_v14, 16  ;;  %v370_v27 = vld [vmem:[%s1536_s23 + $0x8] sm:$0xf]  ;;  %vm619_vm9 = vcmask 1043456  }
  0x14   : > { %v314_v21 = vsel %vm1542_vm7, %v1330_v11, %v313_v12  ;;  %v386_v23 = vor.u32 %v384_v8, %v383_v16  ;;  %v256_v24 = vrot.slane %v254_v17, 4  ;;  %v315_v28 = vrot.slane %v313_v12, 4  ;;  %v334_v33 = vld [vmem:[%s1536_s23] sm:$0x8]  ;;  %v335_v37 = vld [vmem:[%s1536_s23 + $0x4] sm:$0xf] }
  0x15   : > { %321 = vrot.lane.b32.xlu1 %v314_v21, %s1472_s24  ;;  %v259_v25 = vrot.slane %v257_v18, 5  ;;  %v390_v32 = vshrl.u32 %v370_v27, 16  ;;  %v265_v35 = vrot.slane %v263_v22, 5  ;;  %v269_v36 = vrot.slane %v267_v26, 4  ;;  %v249_v42 = vld [vmem:[%s1536_s23 + $0x8] sm:$0xf] }
  0x16   : > { %v387_v30 = vsel %vm1553_vm8, %v1332_v15, %v386_v23  ;;  %v1331_v39 = vrot.slane %v334_v33, 11  ;;  %v317_v41 = vsel %vm1542_vm7, %v315_v28, %v316_v29  ;;  %v393_v44 = vshll.u32 %v370_v27, 16  ;;  %v1590_v50 = vld [vmem:[%s1536_s23 + $0x8] sm:$0xf]  ;;  %v438_v58 = vld [vmem:[%s1536_s23 + $0x4] sm:$0xc] }
  0x17   : > { %v260_v31 = vor.u32 %v259_v25, %v256_v24  ;;  %406 = vrot.lane.b32.xlu0 %v387_v30, %s1473_s25  ;;  %v1581_v43 = vrot.slane %v390_v32, 7  ;;  %v347_v45 = vrot.slane %v335_v37, 7  ;;  %v270_v48 = vor.u32 %v269_v36, %v265_v35  ;;  %v473_v54 = vld [vmem:[%s1536_s23 + $0x8] sm:$0xf]  ;;  %v472_v61 = vld [vmem:[%s1536_s23 + $0x4] sm:$0xc] }
  0x18   : > { %v273_v49 = vshll.u32 %v249_v42, 16  ;;  %v388_v51 = vrot.slane %v383_v16, 4  ;;  %v350_v55 = vrot.slane %v1590_v50, 7  ;;  %v439_v60 = vld [vmem:[%s1536_s23 + $0x8] sm:$0xf]  ;;  %v489_v62 = vshrl.u32 %v473_v54, 16 }
  0x19   : > { %v261_v34 = vrot.slane %v260_v31, 4  ;;  %v348_v46 = vsel %vm1567_vm12, %v1331_v39, %v347_v45  ;;  %v395_v52 = vor.u32 %v393_v44, %v1581_v43  ;;  %v349_v53 = vrot.slane %v347_v45, 4  ;;  %v474_v2 = vld [vmem:[%s1536_s23 + $0xc] sm:$0xf]  ;;  %v419_v23 = vld [vmem:[%s1536_s23 + $0x4] sm:$0xf] }
  0x1a   : > { %355 = vrot.lane.b32.xlu2 %v348_v46, %s1474_s26  ;;  %v271_v56 = vrot.slane %v270_v48, 4  ;;  %v1596_v57 = vrot.slane %v273_v49, 5  ;;  %v492_v63 = vshll.u32 %v473_v54, 16  ;;  %v1333_v3 = vrot.slane %v438_v58, 10  ;;  %v1622_v24 = vld [vmem:[%s1536_s23 + $0xc] sm:$0xf] }
  0x1b   : > { %v266_v47 = vsel %vm1572_vm13, %v261_v34, %v265_v35  ;;  %v396_v59 = vsel %vm1553_vm8, %v388_v51, %v395_v52  ;;  %v351_v0 = vsel %vm1567_vm12, %v349_v53, %v350_v55  ;;  %v451_v5 = vrot.slane %v439_v60, 6  ;;  %v420_v25 = vld [vmem:[%s1536_s23 + $0x8] sm:$0xf]  ;;  %v250_v34 = vld [vmem:[%s1536_s23 + $0xc] sm:$0x1]  ;;  %s1435_s21 = smul.u32 24, %s1962_s19 }
  0x1c   : > { %v276_v4 = vsel %vm1572_vm13, %v271_v56, %v1596_v57  ;;  %v480_v6 = vshrl.u32 %v472_v61, 16  ;;  %v483_v7 = vshll.u32 %v472_v61, 16  ;;  %v491_v8 = vrot.slane %v489_v62, 6  ;;  %v531_v37 = vld [vmem:[%s1536_s23 + $0x8] sm:$0xf] }
  0x1d   : > { %323 = vrot.lane.b32.xlu1 %v317_v41, %s1472_s24  ;;  %v494_v9 = vrot.slane %v492_v63, 7  ;;  %v499_v11 = vshrl.u32 %v474_v2, 16  ;;  %v502_v12 = vshll.u32 %v474_v2, 16  ;;  %v277_v14 = vshrl.u32 %v249_v42, 16  ;;  %v371_v42 = vld [vmem:[%s1536_s23 + $0xc] sm:$0xf] }
  0x1e   : > { %v482_v15 = vrot.slane %v480_v6, 6  ;;  %v485_v16 = vrot.slane %v483_v7, 7  ;;  %v452_v17 = vsel %vm1613_vm1, %v1333_v3, %v451_v5  ;;  %vm477_vm4 = vsmask.f32 5392  ;;  %v530_v45 = vld [vmem:[%s1536_s23 + $0x4] sm:$0x8] }
  0x1f   : > { %287 = vrot.lane.b32.xlu0 %v266_v47, %s1475_s27  ;;  %v495_v18 = vor.u32 %v494_v9, %v491_v8  ;;  %v501_v21 = vrot.slane %v499_v11, 6  ;;  %v504_v22 = vrot.slane %v502_v12, 7  ;;  %v279_v27 = vrot.slane %v277_v14, 4  ;;  %vm1628_vm5 = vmor %vm476_vm3, %vm477_vm4  ;;  %v532_v49 = vld [vmem:[%s1536_s23 + $0xc] sm:$0xf] }
  0x20   : > { %v486_v26 = vor.u32 %v485_v16, %v482_v15  ;;  %v453_v31 = vrot.slane %v451_v5, 4  ;;  %v454_v32 = vrot.slane %v1622_v24, 6  ;;  %v283_v41 = vshll.u32 %v250_v34, 16  ;;  %v475_v61 = vld [vmem:[%s1536_s23 + $0x10] sm:$0x7]  ;;  %v1422_v33 = vld [vmem:[%s1927_s3 + $0x28] sm:$0xff] }
  0x21   : > { %v497_v28 = vrot.slane %v495_v18, 4  ;;  %v505_v30 = vor.u32 %v504_v22, %v501_v21  ;;  %v280_v39 = vor.u32 %v279_v27, %v1596_v57  ;;  %v540_v47 = vrot.slane %v531_v37, 7  ;;  %v303_v62 = vld [vmem:[%s1536_s23 + $0xc] sm:$0x1]  ;;  %v533_v21 = vld [vmem:[%s1536_s23 + $0x10] sm:$0x7] }
  0x22   : > { %357 = vrot.lane.b32.xlu2 %v351_v0, %s1474_s26  ;;  %v487_v35 = vrot.slane %v486_v26, 4  ;;  %v455_v44 = vsel %vm1613_vm1, %v453_v31, %v454_v32  ;;  %v399_v48 = vshrl.u32 %v371_v42, 16  ;;  %v285_v52 = vrot.slane %v283_v41, 5  ;;  %v337_v3 = vld [vmem:[%s1536_s23 + $0xc] sm:$0x7]  ;;  %v1413_v41 = vld [vmem:[%s1925_s1 + $0x10] sm:$0xff] }
  0x23   : > { %v506_v36 = vsel %vm1628_vm5, %v497_v28, %v505_v30  ;;  %v281_v51 = vrot.slane %v280_v39, 4  ;;  %v1334_v53 = vrot.slane %v530_v45, 11  ;;  %v542_v54 = vrot.slane %v540_v47, 4  ;;  %v240_v26 = vld [vmem:[%s1536_s23] sm:$0xf]  ;;  %v1414_v39 = vld [vmem:[%s1925_s1 + $0x18] sm:$0xff] }
  0x24   : > { %v496_v46 = vsel %vm1628_vm5, %v487_v35, %v495_v18  ;;  %v543_v56 = vrot.slane %v532_v49, 7  ;;  %v401_v57 = vrot.slane %v399_v48, 7  ;;  %v402_v58 = vshll.u32 %v371_v42, 16  ;;  %v421_v18 = vld [vmem:[%s1536_s23 + $0xc] sm:$0xf]  ;;  %v1411_v48 = vld [vmem:[%s1925_s1] sm:$0xff] }
  0x25   : > { %408 = vrot.lane.b32.xlu1 %v396_v59, %s1473_s25  ;;  %v286_v59 = vsel %vm1572_vm13, %v281_v51, %v285_v52  ;;  %v541_v60 = vsel %vm1567_vm12, %v1334_v53, %v540_v47  ;;  %v397_v0 = vrot.slane %v1581_v43, 4  ;;  %v512_v5 = vshll.u32 %v475_v61, 16  ;;  %244 = vst.msk [vmem:[#allocation3] sm:$0xf] %vm243_vm6, %v240_v26  ;;  %v241_v27 = vld [vmem:[%s1536_s23 + $0x4] sm:$0xf] }
  0x26   : > { %v544_v63 = vsel %vm1567_vm12, %v542_v54, %v543_v56  ;;  %v404_v2 = vor.u32 %v402_v58, %v401_v57  ;;  %v318_v6 = vrot.slane %v316_v29, 4  ;;  %v319_v7 = vrot.slane %v303_v62, 5  ;;  %v441_v29 = vld [vmem:[%s1536_s23 + $0x10] sm:$0x3]  ;;  %245 = vst.msk [vmem:[#allocation3 + $0x4] sm:$0xf] %vm243_vm6, %v241_v27 }
  0x27   : > { %289 = vrot.lane.b32.xlu0 %v276_v4, %s1475_s27  ;;  %v509_v4 = vshrl.u32 %v475_v61, 16  ;;  %v352_v8 = vrot.slane %v350_v55, 4  ;;  %v353_v9 = vrot.slane %v337_v3, 7  ;;  %v514_v12 = vrot.slane %v512_v5, 7  ;;  %v242_v47 = vld [vmem:[%s1536_s23 + $0x8] sm:$0xf] }
  0x28   : > { %v405_v43 = vsel %vm1553_vm8, %v397_v0, %v404_v2  ;;  %v320_v14 = vsel %vm1542_vm7, %v318_v6, %v319_v7  ;;  %v507_v50 = vrot.slane %v505_v30, 4  ;;  %v456_v15 = vrot.slane %v454_v32, 4  ;;  %v572_v30 = vld [vmem:[%s1925_s1 + $0x20] sm:$0xf]  ;;  %246 = vst.msk [vmem:[#allocation3 + $0x8] sm:$0xf] %vm243_vm6, %v242_v47 }
  0x29   : > { %v511_v11 = vrot.slane %v509_v4, 6  ;;  %v354_v19 = vsel %vm1567_vm12, %v352_v8, %v353_v9  ;;  %v457_v16 = vrot.slane %v441_v29, 6  ;;  %v546_v24 = vrot.slane %v533_v21, 7  ;;  %s1481_s23 = smov 80  }
  0x2a   : > { %425 = vrot.lane.b32.xlu2 %v419_v23, %s1477_s29  ;;  %v545_v23 = vrot.slane %v543_v56, 4  ;;  %v602_v31 = vunpack.c.l.b16 %v572_v30  ;;  %vm296_vm10 = vcmask 126016   ;;  %vm330_vm11 = vcmask 191616  }
  0x2b   : > { %v515_v55 = vor.u32 %v514_v12, %v511_v11  ;;  %v458_v22 = vsel %vm1613_vm1, %v456_v15, %v457_v16  ;;  %vm364_vm14 = vcmask 257216   ;;  %vm415_vm15 = vcmask 322816  }
  0x2c   : > { %v607_v34 = vpack.c.b16 %v602_v31, %v602_v31  ;;  %vm1931_vm3 = vcmask 388416   ;;  %vm1932_vm4 = vcmask 454016   ;;  %vm1933_vm6 = vcmask 519616  }
  0x2d   : > { %459 = vrot.lane.b32.xlu1 %v452_v17, %s1476_s28  ;;  %v516_v17 = vsel %vm1628_vm5, %v507_v50, %v515_v55  ;;  %vm232_vm0 = vcmask 125955   ;;  %v668_v12 = vlaneseq }
  0x2f   : > { %427 = vrot.lane.b32.xlu0 %v420_v25, %s1477_s29  ;;  %v547_v25 = vsel %vm1567_vm12, %v545_v23, %v546_v24 }
  0x32   : > { %461 = vrot.lane.b32.xlu2 %v455_v44, %s1476_s28 }
  0x35   : > { %519 = vrot.lane.b32.xlu1 %v506_v36, %s1478_s30  ;;  %v621_v36 = vsel %vm619_vm9, %v607_v34, 0  ;;  %vm557_vm9 = vcmask 585216  }
  0x36   : > { %626 = vmatpush.bf16.msra.mxu0 %v621_v36 }
  0x37   : > { %517 = vrot.lane.b32.xlu0 %v496_v46, %s1478_s30  ;;  %v1412_v46 = vld [vmem:[%s1925_s1 + $0x8] sm:$0xff] }
  0x3a   : > { %548 = vrot.lane.b32.xlu2 %v541_v60, %s1479_s6  ;;  %627 = vmatpush.bf16.msra.mxu0 %v1414_v39 }
  0x3d   : > { %291 = vrot.lane.b32.xlu1 %v286_v59, %s1475_s27 }
  0x3e   : > { %628 = vmatpush.bf16.msra.mxu0 %v1413_v41 }
  0x3f   : > { %550 = vrot.lane.b32.xlu0 %v544_v63, %s1479_s6  ;;  %v235_v63 = vld [vmem:[#allocation2 + $0xc] sm:$0x8] }
  0x42   : > { %325 = vrot.lane.b32.xlu2 %v320_v14, %s1472_s24  ;;  %629 = vmatpush.bf16.msra.mxu0 %v1412_v46  ;;  %v1740_v14 = vshrl.u32 %v668_v12, 7 }
  0x44   : > { %v676_v29 = vshrl.u32 %v1740_v14, 16 }
  0x45   : > { %410 = vrot.lane.b32.xlu1 %v405_v43, %s1473_s25 }
  0x46   : > { %630 = vmatpush.bf16.msra.mxu0 %v1411_v48  ;;  %v680_v15 = vmul.u32 43691, %v676_v29  ;;  %v681_v23 = vmul.u32 43690, %v676_v29 }
  0x47   : > { %359 = vrot.lane.b32.xlu0 %v354_v19, %s1474_s26  ;;  %v675_v19 = vand.u32 65535, %v1740_v14  ;;  %s1482_s26 = smov 96  }
  0x48   : > { %v685_v46 = vshrl.u32 %v680_v15, 16 }
  0x49   : > { %v679_v50 = vmul.u32 43690, %v675_v19  ;;  %v678_v55 = vmul.u32 43691, %v675_v19 }
  0x4a   : > { %429 = vrot.lane.b32.xlu2 %v421_v18, %s1477_s29  ;;  %v684_v18 = vshll.u32 %v680_v15, 16 }
  0x4b   : > { %v682_v16 = vshll.u32 %v679_v50, 16 }
  0x4d   : > { %521 = vrot.lane.b32.xlu1 %v516_v17, %s1478_s30  ;;  %v1745_v17 = vadd.s32 8, %v1740_v14  ;;  %v688_v21 = vadd.s32 %v682_v16, %v678_v55 }
  0x4f   : > { %463 = vrot.lane.b32.xlu0 %v458_v22, %s1476_s28  ;;  %v704_v22 = vand.u32 65535, %v1745_v17  ;;  %v705_v24 = vshrl.u32 %v1745_v17, 16 }
  0x51   : > { %v708_v27 = vmul.u32 43690, %v704_v22  ;;  %v709_v30 = vmul.u32 43691, %v705_v24  ;;  %v710_v41 = vmul.u32 43690, %v705_v24 }
  0x52   : > { %552 = vrot.lane.b32.xlu2 %v547_v25, %s1479_s6  ;;  %v1480_v25 = vmov 0  }
  0x53   : > { %v711_v31 = vshll.u32 %v708_v27, 16 }
  0x74   : > { %v356_v28 = vpop.permute.xlu2 %355 }
  0x7c   : > { %v358_v32 = vpop.permute.xlu2 %357 }
  0x84   : > { %v426_v44 = vpop.permute.xlu2 %425 }
  0x87   : > { %v322_v35 = vpop.permute.xlu1 %321 }
  0x89   : > { %v407_v37 = vpop.permute.xlu0 %406 }
  0x8c   : > { %v462_v52 = vpop.permute.xlu2 %461 }
  0x8f   : > { %v324_v42 = vpop.permute.xlu1 %323 }
  0x91   : > { %v288_v45 = vpop.permute.xlu0 %287 }
  0x92   : > { %297 = vst.msk [vmem:[#allocation3] sm:$0xf] %vm296_vm10, %v288_v45 }
  0x93   : > { %331 = vst.msk [vmem:[#allocation3] sm:$0xf] %vm330_vm11, %v322_v35  ;;  %v713_v35 = vshll.u32 %v709_v30, 16 }
  0x94   : > { %365 = vst.msk [vmem:[#allocation3] sm:$0xf] %vm364_vm14, %v356_v28  ;;  %v549_v56 = vpop.permute.xlu2 %548  ;;  %v707_v28 = vmul.u32 43691, %v704_v22 }
  0x95   : > { %416 = vst.msk [vmem:[#allocation3] sm:$0xf] %vm415_vm15, %v407_v37  ;;  %v683_v37 = vshrl.u32 %v679_v50, 16 }
  0x96   : > { %435 = vst.msk [vmem:[#allocation3] sm:$0xf] %vm1931_vm3, %v426_v44  ;;  %v717_v36 = vadd.s32 %v711_v31, %v707_v28 }
  0x97   : > { %v409_v49 = vpop.permute.xlu1 %408 }
  0x99   : > { %v290_v51 = vpop.permute.xlu0 %289 }
  0x9a   : > { %298 = vst.msk [vmem:[#allocation3 + $0x4] sm:$0xf] %vm296_vm10, %v290_v51 }
  0x9b   : > { %332 = vst.msk [vmem:[#allocation3 + $0x4] sm:$0xf] %vm330_vm11, %v324_v42  ;;  %v1752_v42 = vadd.s32 16, %v1740_v14 }
  0x9c   : > { %366 = vst.msk [vmem:[#allocation3 + $0x4] sm:$0xf] %vm364_vm14, %v358_v32  ;;  %v326_v59 = vpop.permute.xlu2 %325 }
  0x9d   : > { %417 = vst.msk [vmem:[#allocation3 + $0x4] sm:$0xf] %vm415_vm15, %v409_v49  ;;  %v733_v45 = vand.u32 65535, %v1752_v42  ;;  %v734_v49 = vshrl.u32 %v1752_v42, 16 }
  0x9f   : > { %v460_v53 = vpop.permute.xlu1 %459  ;;  %v737_v51 = vmul.u32 43690, %v733_v45 }
  0xa0   : > { %469 = vst.msk [vmem:[#allocation3] sm:$0xf] %vm1932_vm4, %v460_v53 }
  0xa1   : > { %v428_v54 = vpop.permute.xlu0 %427 }
  0xa2   : > { %436 = vst.msk [vmem:[#allocation3 + $0x4] sm:$0xf] %vm1931_vm3, %v428_v54  ;;  %vm233_vm3 = vsmask.f32 7950  ;;  %v712_v54 = vshrl.u32 %v708_v27, 16 }
  0xa3   : > { %470 = vst.msk [vmem:[#allocation3 + $0x4] sm:$0xf] %vm1932_vm4, %v462_v52  ;;  %vm1725_vm4 = vmand %vm232_vm0, %vm233_vm3  ;;  %vm1950_vm0 = vcmask 388416   ;;  %vm715_vm3 = vc.u32 %v707_v28, %v711_v31 }
  0xa4   : > { %v236_v0 = vsel %vm1725_vm4, 0, %v235_v63  ;;  %v430_v3 = vpop.permute.xlu2 %429  ;;  %v716_v44 = vsel %vm715_vm3, 1, %v1480_v25  ;;  %v714_v63 = vshrl.u32 %v709_v30, 16 }
  0xa5   : > { %237 = vst [vmem:[#allocation2 + $0xc] sm:$0x8] %v236_v0  ;;  %v718_v48 = vadd.s32 %v716_v44, %v710_v41 }
  0xa7   : > { %v520_v57 = vpop.permute.xlu1 %519 }
  0xa8   : > { %528 = vst.msk [vmem:[#allocation3 + $0x4] sm:$0xf] %vm1933_vm6, %v520_v57  ;;  %v736_v57 = vmul.u32 43691, %v733_v45 }
  0xa9   : > { %v518_v58 = vpop.permute.xlu0 %517 }
  0xaa   : > { %527 = vst.msk [vmem:[#allocation3] sm:$0xf] %vm1933_vm6, %v518_v58  ;;  %vm612_vm6 = vcmask 588800   ;;  %v738_v58 = vmul.u32 43691, %v734_v49 }
  0xab   : > { %558 = vst.msk [vmem:[#allocation3] sm:$0xf] %vm557_vm9, %v549_v56 }
  0xac   : > { %v553_v8 = vpop.permute.xlu2 %552  ;;  %v743_v28 = vshrl.u32 %v738_v58, 16 }
  0xaf   : > { %v292_v60 = vpop.permute.xlu1 %291 }
  0xb0   : > { %299 = vst.msk [vmem:[#allocation3 + $0x8] sm:$0xf] %vm296_vm10, %v292_v60  ;;  %vm1951_vm10 = vcmask 454016   ;;  %v1456_v60 = vld [vmem:[%s1926_s2] ss:$0 sm:$0xff] }
  0xb1   : > { %333 = vst.msk [vmem:[#allocation3 + $0x8] sm:$0xf] %vm330_vm11, %v326_v59  ;;  %v551_v61 = vpop.permute.xlu0 %550  ;;  %vm1952_vm11 = vcmask 519616   ;;  %v740_v59 = vshll.u32 %v737_v51, 16 }
  0xb2   : > { %559 = vst.msk [vmem:[#allocation3 + $0x4] sm:$0xf] %vm557_vm9, %v551_v61 }
  0xb7   : > { %v411_v2 = vpop.permute.xlu1 %410 }
  0xb9   : > { %v360_v4 = vpop.permute.xlu0 %359  ;;  %v1410_v5 = vld [vmem:[#allocation3] sm:$0xff] }
  0xba   : > { %367 = vst.msk [vmem:[#allocation3 + $0x8] sm:$0xf] %vm364_vm14, %v360_v4  ;;  %1355 = vmatmul.msk.bf16.vlgmr.msra.gmra.mxu0 %vm612_vm6, %v1410_v5  ;;  %vm686_vm14 = vc.u32 %v678_v55, %v682_v16  ;;  %v739_v5 = vmul.u32 43690, %v734_v49  ;;  %v741_v16 = vshrl.u32 %v737_v51, 16 }
  0xbb   : > { %418 = vst.msk [vmem:[#allocation3 + $0x8] sm:$0xf] %vm415_vm15, %v411_v2  ;;  %v687_v26 = vsel %vm686_vm14, 1, %v1480_v25  ;;  %vm690_vm15 = vc.u32 %v688_v21, %v684_v18  ;;  %v742_v2 = vshll.u32 %v738_v58, 16 }
  0xbc   : > { %437 = vst.msk [vmem:[#allocation3 + $0x8] sm:$0xf] %vm1950_vm0, %v430_v3  ;;  %v689_v32 = vadd.s32 %v687_v26, %v681_v23  ;;  %v691_v34 = vsel %vm690_vm15, 1, %v1480_v25  ;;  %v746_v3 = vadd.s32 %v740_v59, %v736_v57 }
  0xbe   : > { %v693_v39 = vadd.s32 %v691_v34, %v689_v32  ;;  %vm748_vm0 = vc.u32 %v746_v3, %v742_v2  ;;  %v822_v3 = vld [vmem:[#allocation2] sm:$0x8] }
  0xbf   : > { %v522_v6 = vpop.permute.xlu1 %521  ;;  %v749_v19 = vsel %vm748_vm0, 1, %v1480_v25 }
  0xc0   : > { %v694_v47 = vadd.s32 %v693_v39, %v683_v37 }
  0xc1   : > { %v464_v7 = vpop.permute.xlu0 %463 }
  0xc2   : > { %471 = vst.msk [vmem:[#allocation3 + $0x8] sm:$0xf] %vm1951_vm10, %v464_v7  ;;  %v695_v53 = vadd.s32 %v694_v47, %v685_v46 }
  0xc3   : > { %529 = vst.msk [vmem:[#allocation3 + $0x8] sm:$0xf] %vm1952_vm11, %v522_v6 }
  0xc4   : > { %560 = vst.msk [vmem:[#allocation3 + $0x8] sm:$0xf] %vm557_vm9, %v553_v8  ;;  %v696_v61 = vshrl.u32 %v695_v53, 2  ;;  %vm744_vm9 = vc.u32 %v736_v57, %v740_v59 }
  0xc5   : > { %v745_v7 = vsel %vm744_vm9, 1, %v1480_v25 }
  0xc6   : > { %v697_v8 = vmul.u32 6, %v696_v61 }
  0xc8   : > { %v698_v29 = vsub.s32 %v1740_v14, %v697_v8 }
  0xca   : > { %vm759_vm10 = vcmp.ne.s32.totalorder %v698_v29, 0  ;;  %vm762_vm11 = vcmp.lt.s32.totalorder %v698_v29, 0  ;;  %v768_v27 = vadd.s32 6, %v698_v29 }
  0xcb   : > { %v563_v9 = vld [vmem:[#allocation3 + $0x8] sm:$0xf]  ;;  %vm765_vm14 = vmand %vm762_vm11, %vm759_vm10 }
  0xcc   : > { %v582_v43 = vunpack.c.l.b16 %v563_v9  ;;  %v771_v34 = vsel %vm765_vm14, %v768_v27, %v698_v29 }
  0xcd   : > { %vm777_vm9 = vcmp.lt.s32.totalorder %v771_v34, 5 }
  0xce   : > { %v584_v11 = vpack.c.b16 %v582_v43, %v582_v43 }
  0xd0   : > { %1356 = vmatmul.msk.bf16.gmra.mxu0 %vm612_vm6, %v584_v11  ;;  %vm719_vm6 = vc.u32 %v717_v36, %v713_v35  ;;  %v747_v11 = vadd.s32 %v745_v7, %v739_v5 }
  0xd1   : > { %v720_v52 = vsel %vm719_vm6, 1, %v1480_v25  ;;  %vm774_vm6 = vcmp.ge.s32.totalorder %v771_v34, 1 }
  0xd2   : > { %v722_v56 = vadd.s32 %v720_v52, %v718_v48  ;;  %v751_v18 = vadd.s32 %v749_v19, %v747_v11  ;;  %vm780_vm10 = vmand %vm774_vm6, %vm777_vm9  ;;  %vm238_vm9 = vcmask 124928  }
  0xd3   : > { %239 = vst.msk [vmem:[#allocation2 + $0x10] sm:$0x7] %vm238_vm9, %v1480_v25 }
  0xd4   : > { %v723_v0 = vadd.s32 %v722_v56, %v712_v54  ;;  %v752_v30 = vadd.s32 %v751_v18, %v741_v16 }
  0xd6   : > { %v724_v9 = vadd.s32 %v723_v0, %v714_v63  ;;  %v753_v35 = vadd.s32 %v752_v30, %v743_v28 }
  0xd8   : > { %v725_v50 = vshrl.u32 %v724_v9, 2  ;;  %v754_v45 = vshrl.u32 %v753_v35, 2 }
  0xda   : > { %v726_v23 = vmul.u32 6, %v725_v50  ;;  %v755_v52 = vmul.u32 6, %v754_v45 }
  0xdc   : > { %v727_v14 = vsub.s32 %v1745_v17, %v726_v23  ;;  %v756_v61 = vsub.s32 %v1752_v42, %v755_v52 }
  0xde   : > { %vm760_vm15 = vcmp.ne.s32.totalorder %v727_v14, 0  ;;  %vm763_vm3 = vcmp.lt.s32.totalorder %v727_v14, 0  ;;  %v769_v44 = vadd.s32 6, %v727_v14  ;;  %vm764_vm6 = vcmp.lt.s32.totalorder %v756_v61, 0 }
  0xdf   : > { %vm766_vm0 = vmand %vm763_vm3, %vm760_vm15  ;;  %vm761_vm3 = vcmp.ne.s32.totalorder %v756_v61, 0  ;;  %v770_v42 = vadd.s32 6, %v756_v61 }
  0xe0   : > { %v772_v49 = vsel %vm766_vm0, %v769_v44, %v727_v14  ;;  %vm767_vm0 = vmand %vm764_vm6, %vm761_vm3 }
  0xe1   : > { %vm775_vm11 = vcmp.ge.s32.totalorder %v772_v49, 1  ;;  %vm778_vm14 = vcmp.lt.s32.totalorder %v772_v49, 5  ;;  %v773_v29 = vsel %vm767_vm0, %v770_v42, %v756_v61 }
  0xe2   : > { %vm781_vm15 = vmand %vm775_vm11, %vm778_vm14  ;;  %vm1953_vm11 = vcmask 125952  }
  0xe3   : > { %vm1955_vm3 = vmmov %vm1953_vm11 }
  0xe4   : > { %vm1956_vm6 = vmmov %vm1955_vm3 }
 0x137   : > { %v632_v4 = vpop.f32.mrf.mxu0 }
 0x138   : > { %v633_v6 = vadd.f32 %v1456_v60, %v632_v4 }
 0x13a   : > { %v641_v43 = vmul.f32 %v633_v6, %v633_v6 }
 0x13c   : > { %v644_v12 = vmul.f32 %v641_v43, %v633_v6 }
 0x13e   : > { %v647_v55 = vmul.f32 0.044715, %v644_v12 }
 0x13f   : > { %v634_v15 = vpop.f32.mrf.mxu0 }
 0x140   : > { %v650_v21 = vadd.f32 %v647_v55, %v633_v6  ;;  %v635_v22 = vadd.f32 %v1456_v60, %v634_v15 }
 0x142   : > { %v653_v24 = vmul.f32 0.7978846, %v650_v21  ;;  %v642_v26 = vmul.f32 %v635_v22, %v635_v22 }
 0x144   : > { %1458 = vtanh.f32 %v653_v24  ;;  %v645_v31 = vmul.f32 %v642_v26, %v635_v22 }
 0x146   : > { %v648_v32 = vmul.f32 0.044715, %v645_v31 }
 0x148   : > { %v651_v36 = vadd.f32 %v648_v32, %v635_v22 }
 0x14a   : > { %v1459_v37 = vpop.eup %1458  ;;  %v654_v39 = vmul.f32 0.7978846, %v651_v36 }
 0x14b   : > { %v659_v41 = vadd.f32 1.0, %v1459_v37 }
 0x14c   : > { %1460 = vtanh.f32 %v654_v39 }
 0x14d   : > { %v637_v46 = vpop.f32.mrf.mxu0  ;;  %v662_v47 = vmul.f32 0.5, %v659_v41 }
 0x14e   : > { %v638_v48 = vadd.f32 %v1456_v60, %v637_v46 }
 0x14f   : > { %v665_v17 = vmul.f32 %v662_v47, %v633_v6  ;;  %v828_v47 = vld [vmem:[#allocation2 + $0xc] sm:$0xf] }
 0x150   : > { %v643_v51 = vmul.f32 %v638_v48, %v638_v48 }
 0x151   : > { %v783_v53 = vsel %vm780_vm10, %v665_v17, 0.0  ;;  %vm779_vm10 = vcmp.lt.s32.totalorder %v773_v29, 5 }
 0x152   : > { %v646_v54 = vmul.f32 %v643_v51, %v638_v48  ;;  %v1461_v56 = vpop.eup %1460  ;;  %v786_v57 = vpack.c.bf16 %v783_v53, %v783_v53 }
 0x153   : > { %v660_v58 = vadd.f32 1.0, %v1461_v56 }
 0x154   : > { %v649_v59 = vmul.f32 0.044715, %v646_v54  ;;  %v790_v63 = vshll.u32 %v786_v57, 16  ;;  %v793_v0 = vshrl.u32 %v786_v57, 16 }
 0x155   : > { %v639_v2 = vpop.f32.mrf.mxu0  ;;  %v663_v60 = vmul.f32 0.5, %v660_v58 }
 0x156   : > { %v652_v4 = vadd.f32 %v649_v59, %v638_v48  ;;  %v792_v5 = vrot.slane %v790_v63, 5  ;;  %v795_v6 = vrot.slane %v793_v0, 4 }
 0x157   : > { %v666_v7 = vmul.f32 %v663_v60, %v635_v22  ;;  %v1425_v22 = vld [vmem:[%s1927_s3 + $0x40] sm:$0xff] }
 0x158   : > { %v655_v8 = vmul.f32 0.7978846, %v652_v4  ;;  %v823_v9 = vsel %vm1725_vm4, %v792_v5, %v822_v3  ;;  %v796_v11 = vor.u32 %v795_v6, %v792_v5  ;;  %vm776_vm4 = vcmp.ge.s32.totalorder %v773_v29, 1  ;;  %1253 = vmatpush.bf16.msra.mxu2 %v1425_v22 }
 0x159   : > { %824 = vst [vmem:[#allocation2] sm:$0x8] %v823_v9  ;;  %v784_v43 = vsel %vm781_vm15, %v666_v7, 0.0  ;;  %vm782_vm14 = vmand %vm776_vm4, %vm779_vm10  ;;  %vm1221_vm4 = vcmask 130048  }
 0x15a   : > { %1462 = vtanh.f32 %v655_v8  ;;  %v787_v12 = vpack.c.bf16 %v784_v43, %v784_v43  ;;  %v797_v50 = vrot.slane %v796_v11, 4  ;;  %vm1954_vm15 = vmmov %vm1953_vm11 }
 0x15c   : > { %v799_v19 = vshll.u32 %v787_v12, 16  ;;  %v803_v16 = vshrl.u32 %v787_v12, 16 }
 0x15e   : > { %v801_v55 = vrot.slane %v799_v19, 5  ;;  %v805_v25 = vrot.slane %v803_v16, 4 }
 0x160   : > { %v1463_v15 = vpop.eup %1462  ;;  %v802_v62 = vsel %vm1572_vm13, %v797_v50, %v801_v55  ;;  %v831_v23 = vld [vmem:[#allocation2] sm:$0xf]  ;;  %v806_v27 = vor.u32 %v805_v25, %v801_v55 }
 0x161   : > { %v661_v18 = vadd.f32 1.0, %v1463_v15  ;;  %826 = vst.msk [vmem:[#allocation2 + $0x4] sm:$0xf] %vm1953_vm11, %v802_v62  ;;  %v888_v37 = vld [vmem:[#allocation2] sm:$0xe]  ;;  %vm1099_vm11 = vcmask 1044352  }
 0x162   : > { %834 = vst.msk [vmem:[#allocation4] sm:$0xf] %vm1954_vm15, %v831_v23  ;;  %v807_v34 = vrot.slane %v806_v27, 4  ;;  %v837_v45 = vld [vmem:[#allocation2] sm:$0xf] }
 0x163   : > { %v664_v21 = vmul.f32 0.5, %v661_v18  ;;  %v842_v51 = vshrl.u32 %v837_v45, 16  ;;  %v845_v52 = vshll.u32 %v837_v45, 16  ;;  %v919_v54 = vld [vmem:[#allocation2] sm:$0x8] }
 0x164   : > { %v1358_v58 = vrot.slane %v919_v54, 11 }
 0x165   : > { %v667_v24 = vmul.f32 %v664_v21, %v638_v48  ;;  %v1357_v48 = vrot.slane %v888_v37, 9  ;;  %v844_v61 = vrot.slane %v842_v51, 4  ;;  %v847_v63 = vrot.slane %v845_v52, 5 }
 0x167   : > { %v785_v26 = vsel %vm782_vm14, %v667_v24, 0.0  ;;  %v848_v50 = vor.u32 %v847_v63, %v844_v61  ;;  %vm1264_vm14 = vcmask 64512  }
 0x168   : > { %v788_v28 = vpack.c.bf16 %v785_v26, %v785_v26  ;;  %v998_v30 = vld [vmem:[#allocation2 + $0x4] sm:$0xf] }
 0x169   : > { %1004 = vrot.lane.b32.xlu0 %v998_v30, %s1481_s23  ;;  %v889_v32 = vld [vmem:[#allocation2 + $0x4] sm:$0xf]  ;;  %v849_v24 = vrot.slane %v848_v50, 4 }
 0x16a   : > { %v809_v31 = vshll.u32 %v788_v28, 16  ;;  %v813_v14 = vshrl.u32 %v788_v28, 16  ;;  %v898_v39 = vrot.slane %v889_v32, 5  ;;  %v832_v46 = vld [vmem:[#allocation2 + $0x4] sm:$0xf] }
 0x16b   : > { %835 = vst.msk [vmem:[#allocation4 + $0x8] sm:$0xf] %vm1956_vm6, %v832_v46  ;;  %v920_v56 = vld [vmem:[#allocation2 + $0x4] sm:$0xf]  ;;  %v950_v28 = vld [vmem:[#allocation2] sm:$0x8] }
 0x16c   : > { %v811_v35 = vrot.slane %v809_v31, 5  ;;  %v815_v36 = vrot.slane %v813_v14, 4  ;;  %v899_v49 = vsel %vm1542_vm7, %v1357_v48, %v898_v39  ;;  %v1017_v57 = vld [vmem:[#allocation2 + $0x4] sm:$0xc]  ;;  %v929_v59 = vrot.slane %v920_v56, 7 }
 0x16d   : > { %v1103_v0 = vld [vmem:[#allocation2 + $0x4] sm:$0x8]  ;;  %v1360_v4 = vrot.slane %v1017_v57, 10  ;;  %v900_v16 = vrot.slane %v898_v39, 4  ;;  %v1106_v31 = vld [vmem:[#allocation2 + $0x10] sm:$0x7] }
 0x16e   : > { %v812_v41 = vsel %vm1572_vm13, %v807_v34, %v811_v35  ;;  %v816_v44 = vor.u32 %v815_v36, %v811_v35  ;;  %v838_v60 = vld [vmem:[#allocation2 + $0x4] sm:$0xf]  ;;  %v1361_v7 = vrot.slane %v1103_v0, 11  ;;  %v930_v43 = vsel %vm1567_vm12, %v1358_v58, %v929_v59 }
 0x16f   : > { %827 = vst.msk [vmem:[#allocation2 + $0x8] sm:$0xf] %vm1955_vm3, %v812_v41  ;;  %v851_v42 = vshll.u32 %v838_v60, 16  ;;  %v951_v29 = vld [vmem:[#allocation2 + $0x4] sm:$0xf]  ;;  %v855_v27 = vshrl.u32 %v838_v60, 16 }
 0x170   : > { %v817_v17 = vrot.slane %v816_v44, 4  ;;  %v960_v22 = vshrl.u32 %v951_v29, 16  ;;  %v955_v39 = vshrl.u32 %v950_v28, 16  ;;  %v963_v41 = vshll.u32 %v951_v29, 16 }
 0x171   : > { %906 = vrot.lane.b32.xlu0 %v899_v49, %s1473_s25  ;;  %v853_v18 = vrot.slane %v851_v42, 5  ;;  %v1119_v44 = vrot.slane %v1106_v31, 7  ;;  %v931_v45 = vrot.slane %v929_v59, 4 }
 0x172   : > { %v829_v53 = vsel %vm1526_vm2, %v817_v17, %v828_v47  ;;  %vm1957_vm2 = vmmov %vm1955_vm3  ;;  %v1815_v35 = vrot.slane %v960_v22, 7  ;;  %v857_v47 = vrot.slane %v855_v27, 4  ;;  %v1359_v59 = vrot.slane %v955_v39, 11 }
 0x173   : > { %830 = vst [vmem:[#allocation2 + $0xc] sm:$0xf] %v829_v53  ;;  %vm1958_vm9 = vmmov %vm1957_vm2  ;;  %v854_v32 = vsel %vm1572_vm13, %v849_v24, %v853_v18 }
 0x174   : > { %vm1959_vm0 = vmmov %vm1957_vm2  ;;  %v965_v52 = vor.u32 %v963_v41, %v1815_v35  ;;  %v858_v0 = vor.u32 %v857_v47, %v853_v18 }
 0x175   : > { %vm1960_vm10 = vmmov %vm1959_vm0 }
 0x176   : > { %v999_v2 = vld [vmem:[#allocation2 + $0x8] sm:$0xf] }
 0x177   : > { %v1786_v3 = vld [vmem:[#allocation2 + $0x8] sm:$0xf]  ;;  %1006 = vrot.lane.b32.xlu1 %v999_v2, %s1481_s23 }
 0x178   : > { %v1027_v1 = vrot.slane %v1786_v3, 6  ;;  %v1790_v5 = vld [vmem:[#allocation2 + $0x8] sm:$0xf] }
 0x179   : > { %v1104_v6 = vld [vmem:[#allocation2 + $0x8] sm:$0xf]  ;;  %937 = vrot.lane.b32.xlu0 %v930_v43, %s1476_s28  ;;  %v901_v11 = vrot.slane %v1790_v5, 5  ;;  %v859_v43 = vrot.slane %v858_v0, 4 }
 0x17a   : > { %v1113_v8 = vrot.slane %v1104_v6, 7  ;;  %v1028_v9 = vsel %vm1613_vm1, %v1360_v4, %v1027_v1  ;;  %v1105_v12 = vld [vmem:[#allocation2 + $0xc] sm:$0xf]  ;;  %v833_v62 = vld [vmem:[#allocation2 + $0x8] sm:$0xf]  ;;  %v966_v4 = vsel %vm1553_vm8, %v1359_v59, %v965_v52  ;;  %v1029_v41 = vrot.slane %v1027_v1, 4 }
 0x17b   : > { %1035 = vrot.lane.b32.xlu2 %v1028_v9, %s1482_s26  ;;  %v1116_v15 = vrot.slane %v1105_v12, 7  ;;  %v839_v25 = vld [vmem:[#allocation2 + $0x8] sm:$0xf]  ;;  %v902_v23 = vsel %vm1542_vm7, %v900_v16, %v901_v11  ;;  %836 = vst.msk [vmem:[#allocation4 + $0x10] sm:$0xf] %vm1959_vm0, %v833_v62 }
 0x17c   : > { %v1114_v19 = vsel %vm1567_vm12, %v1361_v7, %v1113_v8  ;;  %v1115_v55 = vrot.slane %v1113_v8, 4  ;;  %v921_v26 = vld [vmem:[#allocation2 + $0x8] sm:$0xf]  ;;  %v861_v30 = vshll.u32 %v839_v25, 16  ;;  %v1000_v14 = vld [vmem:[#allocation2 + $0xc] sm:$0xf] }
 0x17d   : > { %1124 = vst.msk [vmem:[#allocation4 + $0x4] sm:$0xf] %vm1957_vm2, %v1114_v19  ;;  %v922_v34 = vld [vmem:[#allocation2 + $0xc] sm:$0x7]  ;;  %v865_v36 = vshrl.u32 %v839_v25, 16  ;;  %v932_v37 = vrot.slane %v921_v26, 7 }
 0x17e   : > { %v1117_v21 = vsel %vm1567_vm12, %v1115_v55, %v1116_v15  ;;  %v935_v46 = vrot.slane %v922_v34, 7  ;;  %v863_v48 = vrot.slane %v861_v30, 5  ;;  %v1819_v17 = vld [vmem:[#allocation2 + $0xc] sm:$0xf]  ;;  %v1118_v54 = vrot.slane %v1116_v15, 4 }
 0x17f   : > { %1125 = vst.msk [vmem:[#allocation4 + $0xc] sm:$0xf] %vm1958_vm9, %v1117_v21  ;;  %908 = vrot.lane.b32.xlu1 %v902_v23, %s1473_s25  ;;  %v867_v53 = vrot.slane %v865_v36, 4  ;;  %v933_v56 = vsel %vm1567_vm12, %v931_v45, %v932_v37  ;;  %v840_v58 = vld [vmem:[#allocation2 + $0xc] sm:$0x1]  ;;  %v934_v61 = vrot.slane %v932_v37, 4 }
 0x180   : > { %v1120_v63 = vsel %vm1567_vm12, %v1118_v54, %v1119_v44  ;;  %v1030_v2 = vrot.slane %v1819_v17, 6  ;;  %v1020_v6 = vld [vmem:[#allocation2 + $0x10] sm:$0x3]  ;;  %v871_v8 = vshll.u32 %v840_v58, 16  ;;  %v953_v9 = vld [vmem:[#allocation2 + $0xc] sm:$0xf]  ;;  %v864_v38 = vsel %vm1572_vm13, %v859_v43, %v863_v48 }
 0x181   : > { %875 = vrot.lane.b32.xlu0 %v854_v32, %s1472_s24  ;;  %1126 = vst.msk [vmem:[#allocation4 + $0x14] sm:$0xf] %vm1960_vm10, %v1120_v63  ;;  %v936_v60 = vsel %vm1567_vm12, %v934_v61, %v935_v46  ;;  %v868_v7 = vor.u32 %v867_v53, %v863_v48  ;;  %v1033_v12 = vrot.slane %v1020_v6, 6  ;;  %v952_v19 = vld [vmem:[#allocation2 + $0x8] sm:$0xf]  ;;  %v978_v55 = vshrl.u32 %v953_v9, 16 }
 0x182   : > { %v1032_v42 = vrot.slane %v1030_v2, 4  ;;  %v873_v50 = vrot.slane %v871_v8, 5  ;;  %v1050_v15 = vld [vmem:[#allocation2 + $0xc] sm:$0xf]  ;;  %v969_v62 = vshrl.u32 %v952_v19, 16  ;;  %v981_v28 = vshll.u32 %v953_v9, 16 }
 0x183   : > { %1008 = vrot.lane.b32.xlu2 %v1000_v14, %s1481_s23  ;;  %v869_v29 = vrot.slane %v868_v7, 4  ;;  %v891_v16 = vld [vmem:[#allocation2 + $0xc] sm:$0x1]  ;;  %v980_v22 = vrot.slane %v978_v55, 7  ;;  %v1051_v25 = vld [vmem:[#allocation2 + $0x10] sm:$0x7]  ;;  %v1031_v48 = vsel %vm1613_vm1, %v1029_v41, %v1030_v2 }
 0x184   : > { %v1415_v49 = vld [vmem:[#allocation4 + $0x4] sm:$0xf]  ;;  %v1034_v18 = vsel %vm1613_vm1, %v1032_v42, %v1033_v12  ;;  %v1072_v23 = vshrl.u32 %v1050_v15, 16  ;;  %v1075_v24 = vshll.u32 %v1050_v15, 16  ;;  %v904_v26 = vrot.slane %v891_v16, 5  ;;  %v1423_v7 = vld [vmem:[%s1927_s3 + $0x30] sm:$0xff] }
 0x185   : > { %v874_v21 = vsel %vm1572_vm13, %v869_v29, %v873_v50  ;;  %v971_v27 = vrot.slane %v969_v62, 7  ;;  %v903_v30 = vrot.slane %v901_v11, 4  ;;  %v1082_v31 = vshrl.u32 %v1051_v25, 16  ;;  %v1048_v36 = vld [vmem:[#allocation2 + $0x4] sm:$0xc]  ;;  %v1420_v29 = vld [vmem:[%s1927_s3 + $0x18] sm:$0xff] }
 0x186   : > { %v1366_v51 = vld [vmem:[#allocation4 + $0x8] sm:$0xf0]  ;;  %v983_v14 = vor.u32 %v981_v28, %v980_v22  ;;  %v1074_v32 = vrot.slane %v1072_v23, 6  ;;  %v1077_v34 = vrot.slane %v1075_v24, 7  ;;  %v1085_v40 = vshll.u32 %v1051_v25, 16  ;;  %v1421_v43 = vld [vmem:[%s1927_s3 + $0x20] sm:$0xff] }
 0x187   : > { %v1369_v57 = vor.u32 %v1415_v49, %v1366_v51  ;;  %939 = vrot.lane.b32.xlu1 %v933_v56, %s1476_s28  ;;  %v905_v37 = vsel %vm1542_vm7, %v903_v30, %v904_v26  ;;  %v976_v39 = vrot.slane %v971_v27, 4  ;;  %v1049_v44 = vld [vmem:[#allocation2 + $0x8] sm:$0xf]  ;;  %v972_v45 = vshll.u32 %v952_v19, 16  ;;  %v1419_v50 = vld [vmem:[%s1927_s3 + $0x10] sm:$0xff]  ;;  %v1417_v62 = vld [vmem:[%s1927_s3] sm:$0xff] }
 0x188   : > { %v1084_v46 = vrot.slane %v1082_v31, 6  ;;  %v1053_v5 = vshrl.u32 %v1048_v36, 16  ;;  %v1056_v11 = vshll.u32 %v1048_v36, 16  ;;  %v1078_v17 = vor.u32 %v1077_v34, %v1074_v32  ;;  %v1418_v15 = vld [vmem:[%s1927_s3 + $0x8] sm:$0xff] }
 0x189   : > { %1406 = vmatmul.msk.bf16.vlgmr.msra.gmra.mxu2 %vm1221_vm4, %v1369_v57  ;;  %985 = vrot.lane.b32.xlu0 %v966_v4, %s1479_s6  ;;  %v984_v47 = vsel %vm1553_vm8, %v976_v39, %v983_v14  ;;  %v1087_v10 = vrot.slane %v1085_v40, 7  ;;  %v974_v49 = vor.u32 %v972_v45, %v971_v27  ;;  %v1062_v3 = vshrl.u32 %v1049_v44, 16  ;;  %v1424_v4 = vld [vmem:[%s1927_s3 + $0x38] sm:$0xff] }
 0x18a   : > { %v1065_v1 = vshll.u32 %v1049_v44, 16  ;;  %v967_v51 = vrot.slane %v1815_v35, 4  ;;  %v1055_v52 = vrot.slane %v1053_v5, 6  ;;  %v1058_v53 = vrot.slane %v1056_v11, 7  ;;  %1426 = vmatpush.bf16.msra.mxu3 %v1424_v4  ;;  %1228 = vmatpush.bf16.msra.mxu1 %v1424_v4 }
 0x18b   : > { %941 = vrot.lane.b32.xlu2 %v936_v60, %s1476_s28  ;;  %v1080_v54 = vrot.slane %v1078_v17, 4  ;;  %v1088_v56 = vor.u32 %v1087_v10, %v1084_v46  ;;  %v1064_v13 = vrot.slane %v1062_v3, 6  ;;  %vm884_vm7 = vcmask 257152   ;;  %v1457_v46 = vld [vmem:[%s1928_s4] ss:$0 sm:$0xff] }
 0x18c   : > { %v975_v57 = vsel %vm1553_vm8, %v967_v51, %v974_v49  ;;  %v1067_v58 = vrot.slane %v1065_v1, 7  ;;  %v1059_v61 = vor.u32 %v1058_v53, %v1055_v52  ;;  %vm915_vm8 = vcmask 388352  }
 0x18d   : > { %v1089_v59 = vsel %vm1628_vm5, %v1080_v54, %v1088_v56  ;;  %vm946_vm12 = vcmask 519552   ;;  %vm994_vm13 = vcmask 650752   ;;  %vm1013_vm1 = vcmask 781952  }
 0x18e   : > { %v1068_v63 = vor.u32 %v1067_v58, %v1064_v13  ;;  %v1060_v0 = vrot.slane %v1059_v61, 4  ;;  %1427 = vmatpush.bf16.msra.mxu3 %v1423_v7  ;;  %1229 = vmatpush.bf16.msra.mxu1 %v1423_v7 }
 0x18f   : > { %877 = vrot.lane.b32.xlu1 %v864_v38, %s1472_s24 }
 0x190   : > { %v1069_v35 = vsel %vm1628_vm5, %v1060_v0, %v1068_v63  ;;  %v1070_v2 = vrot.slane %v1068_v63, 4 }
 0x191   : > { %879 = vrot.lane.b32.xlu0 %v874_v21, %s1472_s24  ;;  %s1483_s24 = smov 112  }
 0x192   : > { %v1079_v20 = vsel %vm1628_vm5, %v1070_v2, %v1078_v17  ;;  %1428 = vmatpush.bf16.msra.mxu3 %v1422_v33  ;;  %1230 = vmatpush.bf16.msra.mxu1 %v1422_v33  ;;  %vm1044_vm5 = vcmask 913152  }
 0x193   : > { %1039 = vrot.lane.b32.xlu2 %v1034_v18, %s1482_s26 }
 0x196   : > { %1429 = vmatpush.bf16.msra.mxu3 %v1421_v43  ;;  %1231 = vmatpush.bf16.msra.mxu1 %v1421_v43 }
 0x197   : > { %910 = vrot.lane.b32.xlu1 %v905_v37, %s1473_s25 }
 0x199   : > { %1037 = vrot.lane.b32.xlu0 %v1031_v48, %s1482_s26  ;;  %s224_s26 = scalar_lea.vmem %s1929_s5, %s1435_s21 }
 0x19a   : > { %1430 = vmatpush.bf16.msra.mxu3 %v1420_v29  ;;  %1232 = vmatpush.bf16.msra.mxu1 %v1420_v29 }
 0x19b   : > { %989 = vrot.lane.b32.xlu2 %v984_v47, %s1479_s6 }
 0x19e   : > { %1431 = vmatpush.bf16.msra.mxu3 %v1419_v50  ;;  %1233 = vmatpush.bf16.msra.mxu1 %v1419_v50 }
 0x19f   : > { %987 = vrot.lane.b32.xlu1 %v975_v57, %s1479_s6 }
 0x1a2   : > { %1432 = vmatpush.bf16.msra.mxu3 %v1418_v15  ;;  %1234 = vmatpush.bf16.msra.mxu1 %v1418_v15 }
 0x1a3   : > { %1094 = vrot.lane.b32.xlu2 %v1089_v59, %s1483_s24 }
 0x1a6   : > { %1433 = vmatpush.bf16.msra.mxu3 %v1417_v62  ;;  %1235 = vmatpush.bf16.msra.mxu1 %v1417_v62 }
 0x1a7   : > { %1090 = vrot.lane.b32.xlu1 %v1069_v35, %s1483_s24 }
 0x1ab   : > { %1092 = vrot.lane.b32.xlu2 %v1079_v20, %s1483_s24 }
 0x1d5   : > { %v1036_v60 = vpop.permute.xlu2 %1035 }
 0x1db   : > { %v1005_v6 = vpop.permute.xlu0 %1004 }
 0x1dd   : > { %v1009_v8 = vpop.permute.xlu2 %1008 }
 0x1e3   : > { %v907_v9 = vpop.permute.xlu0 %906 }
 0x1e5   : > { %v942_v12 = vpop.permute.xlu2 %941 }
 0x1e9   : > { %v1007_v42 = vpop.permute.xlu1 %1006 }
 0x1eb   : > { %v938_v19 = vpop.permute.xlu0 %937 }
 0x1ed   : > { %v1040_v16 = vpop.permute.xlu2 %1039 }
 0x1f1   : > { %v909_v55 = vpop.permute.xlu1 %908 }
 0x1f3   : > { %v876_v38 = vpop.permute.xlu0 %875 }
 0x1f4   : > { %885 = vst.msk [vmem:[#allocation4] sm:$0xf] %vm884_vm7, %v876_v38 }
 0x1f5   : > { %916 = vst.msk [vmem:[#allocation4] sm:$0xf] %vm915_vm8, %v907_v9  ;;  %v990_v22 = vpop.permute.xlu2 %989 }
 0x1f6   : > { %947 = vst.msk [vmem:[#allocation4] sm:$0xf] %vm946_vm12, %v938_v19 }
 0x1f9   : > { %v940_v18 = vpop.permute.xlu1 %939 }
 0x1fb   : > { %v986_v21 = vpop.permute.xlu0 %985 }
 0x1fc   : > { %995 = vst.msk [vmem:[#allocation4] sm:$0xf] %vm994_vm13, %v986_v21 }
 0x1fd   : > { %1014 = vst.msk [vmem:[#allocation4] sm:$0xf] %vm1013_vm1, %v1005_v6  ;;  %v1095_v26 = vpop.permute.xlu2 %1094 }
 0x1fe   : > { %1045 = vst.msk [vmem:[#allocation4] sm:$0xf] %vm1044_vm5, %v1036_v60 }
 0x201   : > { %v878_v25 = vpop.permute.xlu1 %877 }
 0x202   : > { %886 = vst.msk [vmem:[#allocation4 + $0x8] sm:$0xf] %vm884_vm7, %v878_v25 }
 0x203   : > { %917 = vst.msk [vmem:[#allocation4 + $0x8] sm:$0xf] %vm915_vm8, %v909_v55  ;;  %v880_v23 = vpop.permute.xlu0 %879 }
 0x204   : > { %948 = vst.msk [vmem:[#allocation4 + $0x8] sm:$0xf] %vm946_vm12, %v940_v18 }
 0x205   : > { %887 = vst.msk [vmem:[#allocation4 + $0x10] sm:$0xf] %vm884_vm7, %v880_v23  ;;  %v1093_v30 = vpop.permute.xlu2 %1092 }
 0x209   : > { %v911_v24 = vpop.permute.xlu1 %910 }
 0x20a   : > { %918 = vst.msk [vmem:[#allocation4 + $0x10] sm:$0xf] %vm915_vm8, %v911_v24 }
 0x20b   : > { %949 = vst.msk [vmem:[#allocation4 + $0x10] sm:$0xf] %vm946_vm12, %v942_v12  ;;  %v1038_v28 = vpop.permute.xlu0 %1037 }
 0x20c   : > { %997 = vst.msk [vmem:[#allocation4 + $0x10] sm:$0xf] %vm994_vm13, %v990_v22  ;;  %v1255_v44 = vpop.f32.mrf.mxu2 }
 0x20d   : > { %1016 = vst.msk [vmem:[#allocation4 + $0x10] sm:$0xf] %vm1013_vm1, %v1009_v8 }
 0x20e   : > { %1047 = vst.msk [vmem:[#allocation4 + $0x10] sm:$0xf] %vm1044_vm5, %v1040_v16 }
 0x20f   : > { %1102 = vst.msk [vmem:[#allocation4 + $0x10] sm:$0xf] %vm1099_vm11, %v1095_v26 }
 0x211   : > { %v988_v27 = vpop.permute.xlu1 %987 }
 0x212   : > { %996 = vst.msk [vmem:[#allocation4 + $0x8] sm:$0xf] %vm994_vm13, %v988_v27 }
 0x213   : > { %1015 = vst.msk [vmem:[#allocation4 + $0x8] sm:$0xf] %vm1013_vm1, %v1007_v42 }
 0x214   : > { %1046 = vst.msk [vmem:[#allocation4 + $0x8] sm:$0xf] %vm1044_vm5, %v1038_v28  ;;  %v1257_v45 = vpop.f32.mrf.mxu2 }
 0x215   : > { %1101 = vst.msk [vmem:[#allocation4 + $0x8] sm:$0xf] %vm1099_vm11, %v1093_v30 }
 0x216   : > { %v1129_v31 = vld [vmem:[#allocation4 + $0x10] sm:$0xff] }
 0x217   : > { %v1159_v14 = vunpack.c.l.b16 %v1129_v31  ;;  %v1160_v32 = vunpack.c.h.b16 %v1129_v31 }
 0x219   : > { %v1091_v34 = vpop.permute.xlu1 %1090  ;;  %v1163_v40 = vpack.c.b16 %v1159_v14, %v1159_v14  ;;  %v1164_v36 = vpack.c.b16 %v1160_v32, %v1160_v32 }
 0x21a   : > { %1100 = vst.msk [vmem:[#allocation4] sm:$0xf] %vm1099_vm11, %v1091_v34 }
 0x21b   : > { %1241 = vmatmul.bf16.vlgmr.msra.gmra.mxu3 %v1163_v40  ;;  %1407 = vmatmul.msk.bf16.gmra.mxu2 %vm1221_vm4, %v1164_v36 }
 0x21c   : > { %v1416_v39 = vld [vmem:[#allocation4 + $0x4] sm:$0xf0] }
 0x221   : > { %v1364_v37 = vld [vmem:[#allocation4] sm:$0xf] }
 0x222   : > { %v1365_v41 = vor.u32 %v1416_v39, %v1364_v37 }
 0x224   : > { %1236 = vmatmul.bf16.vlgmr.msra.gmra.mxu1 %v1365_v41 }
 0x29e   : > { %v1242_v5 = vpop.f32.mrf.mxu3  ;;  %v1260_v11 = vpop.f32.mrf.mxu2 }
 0x29f   : > { %v1243_v47 = vadd.f32 %v1457_v46, %v1242_v5 }
 0x2a1   : > { %v1261_v48 = vadd.f32 %v1260_v11, %v1243_v47  ;;  %v1237_v17 = vpop.f32.mrf.mxu1 }
 0x2a2   : > { %v1238_v10 = vadd.f32 %v1457_v46, %v1237_v17 }
 0x2a3   : > { %1267 = vst.msk [vmem:[%s224_s26 + $0x10] sm:$0xff] %vm1264_vm14, %v1261_v48 }
 0x2a4   : > { %v1256_v49 = vadd.f32 %v1255_v44, %v1238_v10 }
 0x2a6   : > { %1265 = vst.msk [vmem:[%s224_s26] sm:$0xff] %vm1264_vm14, %v1256_v49  ;;  %v1244_v3 = vpop.f32.mrf.mxu3  ;;  %v1262_v1 = vpop.f32.mrf.mxu2 }
 0x2a9   : > { %v1239_v51 = vpop.f32.mrf.mxu1 }
 0x2aa   : > { %v1240_v52 = vadd.f32 %v1457_v46, %v1239_v51 }
 0x2ac   : > { %v1258_v53 = vadd.f32 %v1257_v45, %v1240_v52 }
 0x2ae   : > { %1266 = vst.msk [vmem:[%s224_s26 + $0x8] sm:$0xff] %vm1264_vm14, %v1258_v53 }
 0x2af PF: > { %s15_s18 = sadd.s32 1, %s1470_s18  }
 0x2b0   : > { %p12_p4 = scmp.ge.s32.totalorder %s15_s18, 4  }
 0x2b2   :  { %14 = sbr.rel (!%p12_p4) target bundleno = 1 (0x1), region = 70 }

</bundles_post_ra>
